<compile_context>
chip_gen: v7x
topology: tpu7x:2x2x1
jax: 0.10.0
libtpu: 0.0.40
codegen_flags: <defaults>
</compile_context>

<pallas_src>
import math

import numpy as np
import jax
import jax.numpy as jnp
from jax.experimental import pallas as pl
from jax.experimental.pallas import tpu as pltpu


# ----------------------------- configuration ------------------------------
B = 2           # batch
BAND = 16       # configs.band_num
STRIDE = 2      # configs.aci_stride
TOKEN = 4       # configs.aci_token
E = 2 * TOKEN + 1                  # token_len = d_model = 9
S = int(np.ceil(BAND / STRIDE))    # strided band count = 8
NHEAD = 3       # configs.aci_nhead  (must divide E)
D = E // NHEAD  # d_kqv
FF = 32         # configs.aci_ff
FC1 = 16        # configs.aci_fc1
FC2 = 8         # configs.aci_fc2
Y = 4           # configs.y_dim

_BN = 1.0 / math.sqrt(1.0 + 1e-5)   # eval-mode BatchNorm1d scale


# -------------------- packed parameter/data slab layout --------------------
def _r8(n):
    return ((n + 7) // 8) * 8


_SLAB_SHAPES = (
    [("tx", (B * S, E)),            # tokenized + PE input, flattened
     ("corr", (S, S)),              # strided correlation map
     ("basel", (B, S)),             # strided baseline
     ("wqkv2", (E, 3 * E)),         # Wq2|Wk2|Wv2, heads packed along lanes
     ("wo2", (E, E)),
     ("seg", (E, NHEAD)),           # head-membership 0/1 (per-head lane->head reduce)
     ("segT", (NHEAD, E))]          # head->lane expansion
    + [(f"wq1_{h}", (E, D)) for h in range(NHEAD)]
    + [(f"wk1_{h}", (E, D)) for h in range(NHEAD)]
    + [(f"wo1_{h}", (D, E)) for h in range(NHEAD)]
    + [("cv", (S, S)),
       ("ff1_w", (E, FF)), ("ff1_b", (1, FF)),
       ("ff2_w", (FF, E)), ("ff2_b", (1, E)),
       ("tv_w", (E, E)), ("tv_b", (1, E)),
       ("beta1", (E, E)),
       ("fc1_w", (S, FC1)), ("fc1_b", (1, FC1)),
       ("fc2_w", (FC1, FC2)), ("fc2_b", (1, FC2)),
       ("fc3_w", (FC2, Y)), ("fc3_b", (1, Y))]
)


def _build_layout():
    layout, off = {}, 0
    for name, (r, c) in _SLAB_SHAPES:
        layout[name] = (off, r, c)
        off += _r8(r)                 # every block starts at an 8-aligned row
    return layout, off


_LAYOUT, _SLAB_ROWS = _build_layout()
_SLAB_W = max(c for _, (_, c) in _SLAB_SHAPES)   # 32 lanes


def _slab_get(slab_ref, name):
    off, r, c = _LAYOUT[name]
    return slab_ref[off:off + r, :c]


# ------------------------------ fused kernel -------------------------------
def acinet_kernel(scal_ref, slab_ref, out_ref):
    """Full ACiNet forward: spectral attention -> encoder FFN -> FC head."""
    g = lambda name: _slab_get(slab_ref, name)

    # scalars live in SMEM (one packed f32[4] array)
    cw = scal_ref[0]     # corr_weight
    hw = scal_ref[1]     # h_weight
    al1 = scal_ref[2]    # alpha1
    al2 = scal_ref[3]    # alpha2
    inv_sqrt_d = 1.0 / math.sqrt(D)

    xf = g("tx")                                        # (B*S, E)

    # ---- attention #2: attends across the batch axis, per band position ----
    qkv2 = jnp.dot(xf, g("wqkv2"), preferred_element_type=jnp.float32)    # (BS, 3E)
    q2 = qkv2[:, :E].reshape(B, S, E)
    k2 = qkv2[:, E:2 * E].reshape(B, S, E)
    v2 = qkv2[:, 2 * E:3 * E].reshape(B, S, E)
    seg, segT = g("seg"), g("segT")

    # logits[b, c, s, h]: unrolled over the (tiny) key-batch index c; the
    # per-head reduction over d is one lane-dense MXU matmul against `seg`
    # (no per-head lane slices, no s-leading transposes).
    lg = []
    for c in range(B):
        prod = (q2 * k2[c][None, :, :]).reshape(B * S, E)        # VPU
        lg.append(jnp.dot(prod, seg,
                          preferred_element_type=jnp.float32) * inv_sqrt_d)  # (BS, H)
    m2 = lg[0]
    for c in range(1, B):
        m2 = jnp.maximum(m2, lg[c])
    p2 = [jnp.exp(l - m2) for l in lg]
    den2 = p2[0]
    for c in range(1, B):
        den2 = den2 + p2[c]
    inv2 = pl.reciprocal(den2)                                    # (BS, H)

    h2acc = None
    for c in range(B):
        w = jnp.dot(p2[c] * inv2, segT,
                    preferred_element_type=jnp.float32).reshape(B, S, E)
        term = w * v2[c][None, :, :]
        h2acc = term if h2acc is None else h2acc + term           # (B, S, E)
    heads2 = jnp.dot(h2acc.reshape(B * S, E), g("wo2"),
                     preferred_element_type=jnp.float32)          # (BS, E)

    # ---- attention #1: attention over bands + correlation bias -------------
    yf = xf + heads2                                              # x + h_ff
    corr_term = (cw / math.sqrt(S)) * jnp.dot(
        g("corr"), g("cv"), preferred_element_type=jnp.float32)   # (S, S)
    corr_b = jnp.broadcast_to(corr_term.reshape(1, S, S), (B, S, S))  # hoisted
    scale1 = (1.0 - cw) * inv_sqrt_d                                  # hoisted

    heads1 = jnp.zeros((B * S, E), jnp.float32)
    for h in range(NHEAD):   # statically unrolled; per-head weights -> no lane slices
        qh = jnp.dot(yf, g(f"wq1_{h}"),
                     preferred_element_type=jnp.float32).reshape(B, S, D)
        kh = jnp.dot(yf, g(f"wk1_{h}"),
                     preferred_element_type=jnp.float32).reshape(B, S, D)
        lgt = jnp.einsum('bsd,btd->bst', qh, kh,
                         preferred_element_type=jnp.float32) * scale1 + corr_b
        m1 = jnp.max(lgt, axis=-1, keepdims=True)
        p1 = jnp.exp(lgt - m1)
        att = p1 * pl.reciprocal(jnp.sum(p1, axis=-1, keepdims=True))
        # values are built from Wq in the original module (Wv unused) -- reproduced
        hd = jnp.einsum('bst,btd->bsd', att, qh,
                        preferred_element_type=jnp.float32)       # (B, S, D)
        heads1 = heads1 + jnp.dot(hd.reshape(B * S, D), g(f"wo1_{h}"),
                                  preferred_element_type=jnp.float32)

    heads_f = (1.0 - hw) * heads1 + hw * heads2                   # (BS, E)

    # ---- SpectrA encoder: residual + BN (eval) + FFN + residual + BN -------
    ma = (heads_f + xf) * _BN                                     # bn1
    h1 = jnp.maximum(jnp.dot(ma, g("ff1_w"),
                             preferred_element_type=jnp.float32)
                     + g("ff1_b"), 0.0) * _BN                     # relu(ff_1), bn2
    h2 = jnp.maximum(jnp.dot(h1, g("ff2_w"),
                             preferred_element_type=jnp.float32)
                     + g("ff2_b"), 0.0)                           # relu(ff_2)
    enc = (ma + h2) * _BN                                         # residual, bn3

    # ---- ACiNet head: token gating, band pooling, FC stack + tanh ----------
    tv = jnp.dot(enc, g("tv_w"), preferred_element_type=jnp.float32) + g("tv_b")
    glog = jnp.dot(enc, g("beta1"), preferred_element_type=jnp.float32)
    gm = jnp.max(glog, axis=-1, keepdims=True)
    gp = jnp.exp(glog - gm)
    gate = gp * pl.reciprocal(jnp.sum(gp, axis=-1, keepdims=True))
    att_f = jnp.sum((tv * gate).reshape(B, S, E), axis=-1)        # (B, S)
    fea = al1 * att_f + al2 * g("basel")
    f1 = jnp.maximum(jnp.dot(fea, g("fc1_w"),
                             preferred_element_type=jnp.float32)
                     + g("fc1_b"), 0.0) * _BN                     # relu(fc1), bn1
    f2 = jnp.maximum(jnp.dot(f1, g("fc2_w"),
                             preferred_element_type=jnp.float32)
                     + g("fc2_b"), 0.0) * _BN                     # relu(fc2), bn2
    out_ref[...] = jnp.tanh(jnp.dot(f2, g("fc3_w"),
                                    preferred_element_type=jnp.float32)
                            + g("fc3_b"))                         # fc3 + tanh


# ------------------------------ pallas wrapper ------------------------------
def acinet_pallas(scalars, slab):
    smem = pl.BlockSpec(memory_space=pltpu.MemorySpace.SMEM)
    vmem = pl.BlockSpec(memory_space=pltpu.MemorySpace.VMEM)
    return pl.pallas_call(
        acinet_kernel,
        out_shape=jax.ShapeDtypeStruct((B, Y), jnp.float32),
        in_specs=[smem, vmem],
        out_specs=vmem,
    )(scalars, slab)


# ------------------------------- JAX glue ----------------------------------
def tokenize(x, token, stride):
    # TODO(synk): Tokenizer source not provided; implemented as a centered
    # sliding window of length 2*token+1 (zero padded), sampled every `stride`.
    b, n = x.shape
    length = 2 * token + 1
    s = int(np.ceil(n / stride))
    xp = jnp.pad(x, ((0, 0), (token, token)))
    win = (np.arange(s) * stride)[:, None] + np.arange(length)[None, :]
    return xp[:, win]                                             # (B, S, L)


def sincos_pe(seq_len, d_model):
    # TODO(synk): SinCosPosEncoding source not provided; standard transformer PE.
    pos = np.arange(seq_len)[:, None].astype(np.float32)
    i = np.arange(d_model)[None, :]
    angle = pos / np.power(10000.0, (2.0 * (i // 2)) / d_model)
    pe = np.where(i % 2 == 0, np.sin(angle), np.cos(angle))
    return jnp.asarray(pe, jnp.float32)


def _uniform(key, shape, bound):
    return jax.random.uniform(key, shape, jnp.float32, -bound, bound)


def init_params(key):
    ks = jax.random.split(key, 24)
    bE, bS, bFF, bFC1, bFC2 = (1.0 / math.sqrt(E), 1.0 / math.sqrt(S),
                               1.0 / math.sqrt(FF), 1.0 / math.sqrt(FC1),
                               1.0 / math.sqrt(FC2))
    return {
        # _multihead_spectral_att (per-head weights stored torch-style (H,E,D));
        # Wv omitted: it is never used in the original forward.
        "Wq":  _uniform(ks[0], (NHEAD, E, D), bE),
        "Wk":  _uniform(ks[1], (NHEAD, E, D), bE),
        "Wq2": _uniform(ks[2], (NHEAD, E, D), bE),
        "Wk2": _uniform(ks[3], (NHEAD, E, D), bE),
        "Wv2": _uniform(ks[4], (NHEAD, E, D), bE),
        "Cv":  _uniform(ks[5], (S, S), bS),
        "Wo1": _uniform(ks[6], (E, E), bE),
        "Wo2": _uniform(ks[7], (E, E), bE),
        "cw":  jnp.full((1,), 0.2, jnp.float32),
        "hw":  jnp.full((1,), 0.8, jnp.float32),
        # SpectrA feed-forward (weights stored (in, out))
        "ff1_w": _uniform(ks[8], (E, FF), bE),
        "ff1_b": _uniform(ks[9], (1, FF), bE),
        "ff2_w": _uniform(ks[10], (FF, E), bFF),
        "ff2_b": _uniform(ks[11], (1, E), bFF),
        # ACiNet head
        "tv_w": _uniform(ks[12], (E, E), bE),
        "tv_b": _uniform(ks[13], (1, E), bE),
        "beta1": jnp.ones((E, E), jnp.float32),
        "alpha1": jnp.full((1,), 0.8, jnp.float32),
        "alpha2": jnp.full((1,), 0.2, jnp.float32),
        "fc1_w": _uniform(ks[14], (S, FC1), bS),
        "fc1_b": _uniform(ks[15], (1, FC1), bS),
        "fc2_w": _uniform(ks[16], (FC1, FC2), bFC1),
        "fc2_b": _uniform(ks[17], (1, FC2), bFC1),
        "fc3_w": _uniform(ks[18], (FC2, Y), bFC2),
        "fc3_b": _uniform(ks[19], (1, Y), bFC2),
    }


def _pack_heads(w):
    """(NHEAD, E, D) -> (E, NHEAD*D) so one matmul produces all heads."""
    h, e, d = w.shape
    return jnp.transpose(w, (1, 0, 2)).reshape(e, h * d)


def _pack_slab(blocks):
    """Concatenate all data/weights into one (rows, 32) f32 slab (one DMA)."""
    parts = []
    for name, (r, c) in _SLAB_SHAPES:
        a = jnp.asarray(blocks[name], jnp.float32).reshape(r, c)
        parts.append(jnp.pad(a, ((0, _r8(r) - r), (0, _SLAB_W - c))))
    return jnp.concatenate(parts, axis=0)


# head-membership matrices for the per-head lane<->head contractions
_SEG_NP = np.kron(np.eye(NHEAD, dtype=np.float32), np.ones((D, 1), np.float32))


@jax.jit
def acinet_forward(params, x, basel, corr_map_full, x_mean, x_scale):
    # preprocessing glue (exactly mirrors ACiNet.forward up to the encoder)
    xn = (x - x_mean) / x_scale
    basel_s = basel[:, ::STRIDE]
    corr_map = corr_map_full[::STRIDE, ::STRIDE]
    tx = tokenize(xn, TOKEN, STRIDE) + sincos_pe(S, E)[None]

    scalars = jnp.concatenate(
        [params["cw"], params["hw"], params["alpha1"], params["alpha2"]]
    ).astype(jnp.float32)                                         # SMEM f32[4]

    blocks = {
        "tx": tx.reshape(B * S, E),
        "corr": corr_map,
        "basel": basel_s,
        "wqkv2": jnp.concatenate([_pack_heads(params["Wq2"]),
                                  _pack_heads(params["Wk2"]),
                                  _pack_heads(params["Wv2"])], axis=1),   # (E, 3E)
        "wo2": params["Wo2"],
        "seg": jnp.asarray(_SEG_NP), "segT": jnp.asarray(_SEG_NP.T),
        "cv": params["Cv"],
        "ff1_w": params["ff1_w"], "ff1_b": params["ff1_b"],
        "ff2_w": params["ff2_w"], "ff2_b": params["ff2_b"],
        "tv_w": params["tv_w"], "tv_b": params["tv_b"],
        "beta1": params["beta1"],
        "fc1_w": params["fc1_w"], "fc1_b": params["fc1_b"],
        "fc2_w": params["fc2_w"], "fc2_b": params["fc2_b"],
        "fc3_w": params["fc3_w"], "fc3_b": params["fc3_b"],
    }
    for h in range(NHEAD):
        blocks[f"wq1_{h}"] = params["Wq"][h]                      # (E, D)
        blocks[f"wk1_{h}"] = params["Wk"][h]                      # (E, D)
        blocks[f"wo1_{h}"] = params["Wo1"][h * D:(h + 1) * D, :]  # (D, E)

    slab = _pack_slab(blocks)
    return acinet_pallas(scalars, slab)


# --------------------------------- main -------------------------------------
if __name__ == "__main__":
    key = jax.random.PRNGKey(0)
    k_x, k_b, k_c, k_p = jax.random.split(key, 4)

    x = jax.random.normal(k_x, (B, BAND), jnp.float32)
    basel = jax.random.normal(k_b, (B, BAND), jnp.float32)
    corr_map_full = jax.random.uniform(k_c, (BAND, BAND), jnp.float32)

    # load_data_scale: min / |max - min| (computed over the full band range
    # since the demo band_num is smaller than the [20:-20] crop), with a
    # tiny-denominator guard.
    x_mean = jnp.min(x)
    x_scale = jnp.maximum(jnp.abs(jnp.max(x - x_mean)), jnp.float32(1e-6))

    params = init_params(k_p)

    out = acinet_forward(params, x, basel, corr_map_full, x_mean, x_scale)
    out = jax.block_until_ready(out)
    assert out.shape == (B, Y) and out.dtype == jnp.float32
    assert bool(jnp.all(jnp.isfinite(out)))
    print("KERNEL_OK")
</pallas_src>

<mosaic_0001>
module attributes {stable_mosaic.version = 11 : i64} {
  func.func @acinet_kernel(%arg0: memref<4xf32, #tpu.memory_space<smem>>, %arg1: memref<376x32xf32, #tpu.memory_space<vmem>>, %arg2: memref<2x4xf32, #tpu.memory_space<vmem>>) attributes {dimension_semantics = [], scalar_prefetch = 0 : i64, scratch_operands = 0 : i64, tpu.core_type = #tpu.core_type<tc>} {
    %c0 = arith.constant 0 : index
    %0 = memref.load %arg0[%c0] : memref<4xf32, #tpu.memory_space<smem>>
    %c1 = arith.constant 1 : index
    %1 = memref.load %arg0[%c1] : memref<4xf32, #tpu.memory_space<smem>>
    %c2 = arith.constant 2 : index
    %2 = memref.load %arg0[%c2] : memref<4xf32, #tpu.memory_space<smem>>
    %c3 = arith.constant 3 : index
    %3 = memref.load %arg0[%c3] : memref<4xf32, #tpu.memory_space<smem>>
    %c0_0 = arith.constant 0 : index
    %c0_1 = arith.constant 0 : index
    %4 = vector.load %arg1[%c0_0, %c0_1] : memref<376x32xf32, #tpu.memory_space<vmem>>, vector<16x9xf32>
    %c32 = arith.constant 32 : index
    %c0_2 = arith.constant 0 : index
    %5 = vector.load %arg1[%c32, %c0_2] : memref<376x32xf32, #tpu.memory_space<vmem>>, vector<9x27xf32>
    %cst = arith.constant dense<0.000000e+00> : vector<16x27xf32>
    %6 = tpu.matmul %4, %5, %cst {dimension_numbers = #tpu.dot_dimension_numbers<[1], [0], [0], [1], [0, 0, 1, 1], [], []>} : vector<16x9xf32>, vector<9x27xf32>, vector<16x27xf32> -> vector<16x27xf32>
    %7 = vector.extract_strided_slice %6 {offsets = [0, 0], sizes = [16, 9], strides = [1, 1]} : vector<16x27xf32> to vector<16x9xf32>
    %8 = vector.shape_cast %7 : vector<16x9xf32> to vector<2x8x9xf32>
    %9 = vector.extract_strided_slice %6 {offsets = [0, 9], sizes = [16, 9], strides = [1, 1]} : vector<16x27xf32> to vector<16x9xf32>
    %10 = vector.shape_cast %9 : vector<16x9xf32> to vector<2x8x9xf32>
    %11 = vector.extract_strided_slice %6 {offsets = [0, 18], sizes = [16, 9], strides = [1, 1]} : vector<16x27xf32> to vector<16x9xf32>
    %12 = vector.shape_cast %11 : vector<16x9xf32> to vector<2x8x9xf32>
    %c64 = arith.constant 64 : index
    %c0_3 = arith.constant 0 : index
    %13 = vector.load %arg1[%c64, %c0_3] : memref<376x32xf32, #tpu.memory_space<vmem>>, vector<9x3xf32>
    %c80 = arith.constant 80 : index
    %c0_4 = arith.constant 0 : index
    %14 = vector.load %arg1[%c80, %c0_4] : memref<376x32xf32, #tpu.memory_space<vmem>>, vector<3x9xf32>
    %15 = vector.extract_strided_slice %10 {offsets = [0, 0, 0], sizes = [1, 8, 9], strides = [1, 1, 1]} : vector<2x8x9xf32> to vector<1x8x9xf32>
    %16 = vector.shape_cast %15 : vector<1x8x9xf32> to vector<8x9xf32>
    %17 = vector.shape_cast %16 : vector<8x9xf32> to vector<1x8x9xf32>
    %18 = vector.broadcast %17 : vector<1x8x9xf32> to vector<2x8x9xf32>
    %19 = arith.mulf %8, %18 : vector<2x8x9xf32>
    %20 = vector.shape_cast %19 : vector<2x8x9xf32> to vector<16x9xf32>
    %cst_5 = arith.constant dense<0.000000e+00> : vector<16x3xf32>
    %21 = tpu.matmul %20, %13, %cst_5 {dimension_numbers = #tpu.dot_dimension_numbers<[1], [0], [0], [1], [0, 0, 1, 1], [], []>} : vector<16x9xf32>, vector<9x3xf32>, vector<16x3xf32> -> vector<16x3xf32>
    %cst_6 = arith.constant 0.577350259 : f32
    %22 = vector.broadcast %cst_6 : f32 to vector<16x3xf32>
    %23 = arith.mulf %21, %22 : vector<16x3xf32>
    %24 = vector.extract_strided_slice %10 {offsets = [1, 0, 0], sizes = [1, 8, 9], strides = [1, 1, 1]} : vector<2x8x9xf32> to vector<1x8x9xf32>
    %25 = vector.shape_cast %24 : vector<1x8x9xf32> to vector<8x9xf32>
    %26 = vector.shape_cast %25 : vector<8x9xf32> to vector<1x8x9xf32>
    %27 = vector.broadcast %26 : vector<1x8x9xf32> to vector<2x8x9xf32>
    %28 = arith.mulf %8, %27 : vector<2x8x9xf32>
    %29 = vector.shape_cast %28 : vector<2x8x9xf32> to vector<16x9xf32>
    %cst_7 = arith.constant dense<0.000000e+00> : vector<16x3xf32>
    %30 = tpu.matmul %29, %13, %cst_7 {dimension_numbers = #tpu.dot_dimension_numbers<[1], [0], [0], [1], [0, 0, 1, 1], [], []>} : vector<16x9xf32>, vector<9x3xf32>, vector<16x3xf32> -> vector<16x3xf32>
    %cst_8 = arith.constant 0.577350259 : f32
    %31 = vector.broadcast %cst_8 : f32 to vector<16x3xf32>
    %32 = arith.mulf %30, %31 : vector<16x3xf32>
    %33 = arith.maximumf %23, %32 : vector<16x3xf32>
    %34 = arith.subf %23, %33 : vector<16x3xf32>
    %35 = math.exp %34 : vector<16x3xf32>
    %36 = arith.subf %32, %33 : vector<16x3xf32>
    %37 = math.exp %36 : vector<16x3xf32>
    %38 = arith.addf %35, %37 : vector<16x3xf32>
    %39 = tpu.reciprocal %38 : vector<16x3xf32> -> vector<16x3xf32>
    %40 = arith.mulf %35, %39 : vector<16x3xf32>
    %cst_9 = arith.constant dense<0.000000e+00> : vector<16x9xf32>
    %41 = tpu.matmul %40, %14, %cst_9 {dimension_numbers = #tpu.dot_dimension_numbers<[1], [0], [0], [1], [0, 0, 1, 1], [], []>} : vector<16x3xf32>, vector<3x9xf32>, vector<16x9xf32> -> vector<16x9xf32>
    %42 = vector.shape_cast %41 : vector<16x9xf32> to vector<2x8x9xf32>
    %43 = vector.extract_strided_slice %12 {offsets = [0, 0, 0], sizes = [1, 8, 9], strides = [1, 1, 1]} : vector<2x8x9xf32> to vector<1x8x9xf32>
    %44 = vector.shape_cast %43 : vector<1x8x9xf32> to vector<8x9xf32>
    %45 = vector.shape_cast %44 : vector<8x9xf32> to vector<1x8x9xf32>
    %46 = vector.broadcast %45 : vector<1x8x9xf32> to vector<2x8x9xf32>
    %47 = arith.mulf %42, %46 : vector<2x8x9xf32>
    %48 = arith.mulf %37, %39 : vector<16x3xf32>
    %cst_10 = arith.constant dense<0.000000e+00> : vector<16x9xf32>
    %49 = tpu.matmul %48, %14, %cst_10 {dimension_numbers = #tpu.dot_dimension_numbers<[1], [0], [0], [1], [0, 0, 1, 1], [], []>} : vector<16x3xf32>, vector<3x9xf32>, vector<16x9xf32> -> vector<16x9xf32>
    %50 = vector.shape_cast %49 : vector<16x9xf32> to vector<2x8x9xf32>
    %51 = vector.extract_strided_slice %12 {offsets = [1, 0, 0], sizes = [1, 8, 9], strides = [1, 1, 1]} : vector<2x8x9xf32> to vector<1x8x9xf32>
    %52 = vector.shape_cast %51 : vector<1x8x9xf32> to vector<8x9xf32>
    %53 = vector.shape_cast %52 : vector<8x9xf32> to vector<1x8x9xf32>
    %54 = vector.broadcast %53 : vector<1x8x9xf32> to vector<2x8x9xf32>
    %55 = arith.mulf %50, %54 : vector<2x8x9xf32>
    %56 = arith.addf %47, %55 : vector<2x8x9xf32>
    %57 = vector.shape_cast %56 : vector<2x8x9xf32> to vector<16x9xf32>
    %c48 = arith.constant 48 : index
    %c0_11 = arith.constant 0 : index
    %58 = vector.load %arg1[%c48, %c0_11] : memref<376x32xf32, #tpu.memory_space<vmem>>, vector<9x9xf32>
    %cst_12 = arith.constant dense<0.000000e+00> : vector<16x9xf32>
    %59 = tpu.matmul %57, %58, %cst_12 {dimension_numbers = #tpu.dot_dimension_numbers<[1], [0], [0], [1], [0, 0, 1, 1], [], []>} : vector<16x9xf32>, vector<9x9xf32>, vector<16x9xf32> -> vector<16x9xf32>
    %60 = arith.addf %4, %59 : vector<16x9xf32>
    %cst_13 = arith.constant 2.82842708 : f32
    %61 = arith.divf %0, %cst_13 : f32
    %c16 = arith.constant 16 : index
    %c0_14 = arith.constant 0 : index
    %62 = vector.load %arg1[%c16, %c0_14] : memref<376x32xf32, #tpu.memory_space<vmem>>, vector<8x8xf32>
    %c208 = arith.constant 208 : index
    %c0_15 = arith.constant 0 : index
    %63 = vector.load %arg1[%c208, %c0_15] : memref<376x32xf32, #tpu.memory_space<vmem>>, vector<8x8xf32>
    %cst_16 = arith.constant dense<0.000000e+00> : vector<8x8xf32>
    %64 = tpu.matmul %62, %63, %cst_16 {dimension_numbers = #tpu.dot_dimension_numbers<[1], [0], [0], [1], [0, 0, 1, 1], [], []>} : vector<8x8xf32>, vector<8x8xf32>, vector<8x8xf32> -> vector<8x8xf32>
    %65 = vector.broadcast %61 : f32 to vector<8x8xf32>
    %66 = arith.mulf %65, %64 : vector<8x8xf32>
    %67 = vector.shape_cast %66 : vector<8x8xf32> to vector<1x8x8xf32>
    %68 = vector.shape_cast %67 : vector<1x8x8xf32> to vector<1x8x8xf32>
    %69 = vector.broadcast %68 : vector<1x8x8xf32> to vector<2x8x8xf32>
    %cst_17 = arith.constant 1.000000e+00 : f32
    %70 = arith.subf %cst_17, %0 : f32
    %cst_18 = arith.constant 0.577350259 : f32
    %71 = arith.mulf %70, %cst_18 : f32
    %cst_19 = arith.constant 0.000000e+00 : f32
    %72 = vector.broadcast %cst_19 : f32 to vector<16x9xf32>
    %c88 = arith.constant 88 : index
    %c0_20 = arith.constant 0 : index
    %73 = vector.load %arg1[%c88, %c0_20] : memref<376x32xf32, #tpu.memory_space<vmem>>, vector<9x3xf32>
    %cst_21 = arith.constant dense<0.000000e+00> : vector<16x3xf32>
    %74 = tpu.matmul %60, %73, %cst_21 {dimension_numbers = #tpu.dot_dimension_numbers<[1], [0], [0], [1], [0, 0, 1, 1], [], []>} : vector<16x9xf32>, vector<9x3xf32>, vector<16x3xf32> -> vector<16x3xf32>
    %75 = vector.shape_cast %74 : vector<16x3xf32> to vector<2x8x3xf32>
    %c136 = arith.constant 136 : index
    %c0_22 = arith.constant 0 : index
    %76 = vector.load %arg1[%c136, %c0_22] : memref<376x32xf32, #tpu.memory_space<vmem>>, vector<9x3xf32>
    %cst_23 = arith.constant dense<0.000000e+00> : vector<16x3xf32>
    %77 = tpu.matmul %60, %76, %cst_23 {dimension_numbers = #tpu.dot_dimension_numbers<[1], [0], [0], [1], [0, 0, 1, 1], [], []>} : vector<16x9xf32>, vector<9x3xf32>, vector<16x3xf32> -> vector<16x3xf32>
    %78 = vector.shape_cast %77 : vector<16x3xf32> to vector<2x8x3xf32>
    "tpu.trace_start"() <{level = 10 : i32, message = "bsd,btd->bst"}> : () -> ()
    %cst_24 = arith.constant dense<0.000000e+00> : vector<2x8x8xf32>
    %79 = tpu.matmul %75, %78, %cst_24 {dimension_numbers = #tpu.dot_dimension_numbers<[2], [2], [1], [1], [0, 0, 0, 1, 1, 1], [0], [0]>} : vector<2x8x3xf32>, vector<2x8x3xf32>, vector<2x8x8xf32> -> vector<2x8x8xf32>
    "tpu.trace_stop"() : () -> ()
    %80 = vector.broadcast %71 : f32 to vector<2x8x8xf32>
    %81 = arith.mulf %79, %80 : vector<2x8x8xf32>
    %82 = arith.addf %81, %69 : vector<2x8x8xf32>
    %cst_25 = arith.constant dense<0xFF800000> : vector<2x8xf32>
    %83 = vector.multi_reduction <maximumf>, %82, %cst_25 [2] : vector<2x8x8xf32> to vector<2x8xf32>
    %84 = vector.shape_cast %83 : vector<2x8xf32> to vector<2x8x1xf32>
    %85 = vector.broadcast %84 : vector<2x8x1xf32> to vector<2x8x8xf32>
    %86 = arith.subf %82, %85 : vector<2x8x8xf32>
    %87 = math.exp %86 : vector<2x8x8xf32>
    %cst_26 = arith.constant dense<0.000000e+00> : vector<2x8xf32>
    %88 = vector.multi_reduction <add>, %87, %cst_26 [2] : vector<2x8x8xf32> to vector<2x8xf32>
    %89 = vector.shape_cast %88 : vector<2x8xf32> to vector<2x8x1xf32>
    %90 = tpu.reciprocal %89 : vector<2x8x1xf32> -> vector<2x8x1xf32>
    %91 = vector.broadcast %90 : vector<2x8x1xf32> to vector<2x8x8xf32>
    %92 = arith.mulf %87, %91 : vector<2x8x8xf32>
    "tpu.trace_start"() <{level = 10 : i32, message = "bst,btd->bsd"}> : () -> ()
    %cst_27 = arith.constant dense<0.000000e+00> : vector<2x8x3xf32>
    %93 = tpu.matmul %92, %75, %cst_27 {dimension_numbers = #tpu.dot_dimension_numbers<[2], [1], [1], [2], [0, 0, 0, 1, 1, 2], [0], [0]>} : vector<2x8x8xf32>, vector<2x8x3xf32>, vector<2x8x3xf32> -> vector<2x8x3xf32>
    "tpu.trace_stop"() : () -> ()
    %94 = vector.shape_cast %93 : vector<2x8x3xf32> to vector<16x3xf32>
    %c184 = arith.constant 184 : index
    %c0_28 = arith.constant 0 : index
    %95 = vector.load %arg1[%c184, %c0_28] : memref<376x32xf32, #tpu.memory_space<vmem>>, vector<3x9xf32>
    %cst_29 = arith.constant dense<0.000000e+00> : vector<16x9xf32>
    %96 = tpu.matmul %94, %95, %cst_29 {dimension_numbers = #tpu.dot_dimension_numbers<[1], [0], [0], [1], [0, 0, 1, 1], [], []>} : vector<16x3xf32>, vector<3x9xf32>, vector<16x9xf32> -> vector<16x9xf32>
    %97 = arith.addf %72, %96 : vector<16x9xf32>
    %c104 = arith.constant 104 : index
    %c0_30 = arith.constant 0 : index
    %98 = vector.load %arg1[%c104, %c0_30] : memref<376x32xf32, #tpu.memory_space<vmem>>, vector<9x3xf32>
    %cst_31 = arith.constant dense<0.000000e+00> : vector<16x3xf32>
    %99 = tpu.matmul %60, %98, %cst_31 {dimension_numbers = #tpu.dot_dimension_numbers<[1], [0], [0], [1], [0, 0, 1, 1], [], []>} : vector<16x9xf32>, vector<9x3xf32>, vector<16x3xf32> -> vector<16x3xf32>
    %100 = vector.shape_cast %99 : vector<16x3xf32> to vector<2x8x3xf32>
    %c152 = arith.constant 152 : index
    %c0_32 = arith.constant 0 : index
    %101 = vector.load %arg1[%c152, %c0_32] : memref<376x32xf32, #tpu.memory_space<vmem>>, vector<9x3xf32>
    %cst_33 = arith.constant dense<0.000000e+00> : vector<16x3xf32>
    %102 = tpu.matmul %60, %101, %cst_33 {dimension_numbers = #tpu.dot_dimension_numbers<[1], [0], [0], [1], [0, 0, 1, 1], [], []>} : vector<16x9xf32>, vector<9x3xf32>, vector<16x3xf32> -> vector<16x3xf32>
    %103 = vector.shape_cast %102 : vector<16x3xf32> to vector<2x8x3xf32>
    "tpu.trace_start"() <{level = 10 : i32, message = "bsd,btd->bst"}> : () -> ()
    %cst_34 = arith.constant dense<0.000000e+00> : vector<2x8x8xf32>
    %104 = tpu.matmul %100, %103, %cst_34 {dimension_numbers = #tpu.dot_dimension_numbers<[2], [2], [1], [1], [0, 0, 0, 1, 1, 1], [0], [0]>} : vector<2x8x3xf32>, vector<2x8x3xf32>, vector<2x8x8xf32> -> vector<2x8x8xf32>
    "tpu.trace_stop"() : () -> ()
    %105 = vector.broadcast %71 : f32 to vector<2x8x8xf32>
    %106 = arith.mulf %104, %105 : vector<2x8x8xf32>
    %107 = arith.addf %106, %69 : vector<2x8x8xf32>
    %cst_35 = arith.constant dense<0xFF800000> : vector<2x8xf32>
    %108 = vector.multi_reduction <maximumf>, %107, %cst_35 [2] : vector<2x8x8xf32> to vector<2x8xf32>
    %109 = vector.shape_cast %108 : vector<2x8xf32> to vector<2x8x1xf32>
    %110 = vector.broadcast %109 : vector<2x8x1xf32> to vector<2x8x8xf32>
    %111 = arith.subf %107, %110 : vector<2x8x8xf32>
    %112 = math.exp %111 : vector<2x8x8xf32>
    %cst_36 = arith.constant dense<0.000000e+00> : vector<2x8xf32>
    %113 = vector.multi_reduction <add>, %112, %cst_36 [2] : vector<2x8x8xf32> to vector<2x8xf32>
    %114 = vector.shape_cast %113 : vector<2x8xf32> to vector<2x8x1xf32>
    %115 = tpu.reciprocal %114 : vector<2x8x1xf32> -> vector<2x8x1xf32>
    %116 = vector.broadcast %115 : vector<2x8x1xf32> to vector<2x8x8xf32>
    %117 = arith.mulf %112, %116 : vector<2x8x8xf32>
    "tpu.trace_start"() <{level = 10 : i32, message = "bst,btd->bsd"}> : () -> ()
    %cst_37 = arith.constant dense<0.000000e+00> : vector<2x8x3xf32>
    %118 = tpu.matmul %117, %100, %cst_37 {dimension_numbers = #tpu.dot_dimension_numbers<[2], [1], [1], [2], [0, 0, 0, 1, 1, 2], [0], [0]>} : vector<2x8x8xf32>, vector<2x8x3xf32>, vector<2x8x3xf32> -> vector<2x8x3xf32>
    "tpu.trace_stop"() : () -> ()
    %119 = vector.shape_cast %118 : vector<2x8x3xf32> to vector<16x3xf32>
    %c192 = arith.constant 192 : index
    %c0_38 = arith.constant 0 : index
    %120 = vector.load %arg1[%c192, %c0_38] : memref<376x32xf32, #tpu.memory_space<vmem>>, vector<3x9xf32>
    %cst_39 = arith.constant dense<0.000000e+00> : vector<16x9xf32>
    %121 = tpu.matmul %119, %120, %cst_39 {dimension_numbers = #tpu.dot_dimension_numbers<[1], [0], [0], [1], [0, 0, 1, 1], [], []>} : vector<16x3xf32>, vector<3x9xf32>, vector<16x9xf32> -> vector<16x9xf32>
    %122 = arith.addf %97, %121 : vector<16x9xf32>
    %c120 = arith.constant 120 : index
    %c0_40 = arith.constant 0 : index
    %123 = vector.load %arg1[%c120, %c0_40] : memref<376x32xf32, #tpu.memory_space<vmem>>, vector<9x3xf32>
    %cst_41 = arith.constant dense<0.000000e+00> : vector<16x3xf32>
    %124 = tpu.matmul %60, %123, %cst_41 {dimension_numbers = #tpu.dot_dimension_numbers<[1], [0], [0], [1], [0, 0, 1, 1], [], []>} : vector<16x9xf32>, vector<9x3xf32>, vector<16x3xf32> -> vector<16x3xf32>
    %125 = vector.shape_cast %124 : vector<16x3xf32> to vector<2x8x3xf32>
    %c168 = arith.constant 168 : index
    %c0_42 = arith.constant 0 : index
    %126 = vector.load %arg1[%c168, %c0_42] : memref<376x32xf32, #tpu.memory_space<vmem>>, vector<9x3xf32>
    %cst_43 = arith.constant dense<0.000000e+00> : vector<16x3xf32>
    %127 = tpu.matmul %60, %126, %cst_43 {dimension_numbers = #tpu.dot_dimension_numbers<[1], [0], [0], [1], [0, 0, 1, 1], [], []>} : vector<16x9xf32>, vector<9x3xf32>, vector<16x3xf32> -> vector<16x3xf32>
    %128 = vector.shape_cast %127 : vector<16x3xf32> to vector<2x8x3xf32>
    "tpu.trace_start"() <{level = 10 : i32, message = "bsd,btd->bst"}> : () -> ()
    %cst_44 = arith.constant dense<0.000000e+00> : vector<2x8x8xf32>
    %129 = tpu.matmul %125, %128, %cst_44 {dimension_numbers = #tpu.dot_dimension_numbers<[2], [2], [1], [1], [0, 0, 0, 1, 1, 1], [0], [0]>} : vector<2x8x3xf32>, vector<2x8x3xf32>, vector<2x8x8xf32> -> vector<2x8x8xf32>
    "tpu.trace_stop"() : () -> ()
    %130 = vector.broadcast %71 : f32 to vector<2x8x8xf32>
    %131 = arith.mulf %129, %130 : vector<2x8x8xf32>
    %132 = arith.addf %131, %69 : vector<2x8x8xf32>
    %cst_45 = arith.constant dense<0xFF800000> : vector<2x8xf32>
    %133 = vector.multi_reduction <maximumf>, %132, %cst_45 [2] : vector<2x8x8xf32> to vector<2x8xf32>
    %134 = vector.shape_cast %133 : vector<2x8xf32> to vector<2x8x1xf32>
    %135 = vector.broadcast %134 : vector<2x8x1xf32> to vector<2x8x8xf32>
    %136 = arith.subf %132, %135 : vector<2x8x8xf32>
    %137 = math.exp %136 : vector<2x8x8xf32>
    %cst_46 = arith.constant dense<0.000000e+00> : vector<2x8xf32>
    %138 = vector.multi_reduction <add>, %137, %cst_46 [2] : vector<2x8x8xf32> to vector<2x8xf32>
    %139 = vector.shape_cast %138 : vector<2x8xf32> to vector<2x8x1xf32>
    %140 = tpu.reciprocal %139 : vector<2x8x1xf32> -> vector<2x8x1xf32>
    %141 = vector.broadcast %140 : vector<2x8x1xf32> to vector<2x8x8xf32>
    %142 = arith.mulf %137, %141 : vector<2x8x8xf32>
    "tpu.trace_start"() <{level = 10 : i32, message = "bst,btd->bsd"}> : () -> ()
    %cst_47 = arith.constant dense<0.000000e+00> : vector<2x8x3xf32>
    %143 = tpu.matmul %142, %125, %cst_47 {dimension_numbers = #tpu.dot_dimension_numbers<[2], [1], [1], [2], [0, 0, 0, 1, 1, 2], [0], [0]>} : vector<2x8x8xf32>, vector<2x8x3xf32>, vector<2x8x3xf32> -> vector<2x8x3xf32>
    "tpu.trace_stop"() : () -> ()
    %144 = vector.shape_cast %143 : vector<2x8x3xf32> to vector<16x3xf32>
    %c200 = arith.constant 200 : index
    %c0_48 = arith.constant 0 : index
    %145 = vector.load %arg1[%c200, %c0_48] : memref<376x32xf32, #tpu.memory_space<vmem>>, vector<3x9xf32>
    %cst_49 = arith.constant dense<0.000000e+00> : vector<16x9xf32>
    %146 = tpu.matmul %144, %145, %cst_49 {dimension_numbers = #tpu.dot_dimension_numbers<[1], [0], [0], [1], [0, 0, 1, 1], [], []>} : vector<16x3xf32>, vector<3x9xf32>, vector<16x9xf32> -> vector<16x9xf32>
    %147 = arith.addf %122, %146 : vector<16x9xf32>
    %cst_50 = arith.constant 1.000000e+00 : f32
    %148 = arith.subf %cst_50, %1 : f32
    %149 = vector.broadcast %148 : f32 to vector<16x9xf32>
    %150 = arith.mulf %149, %147 : vector<16x9xf32>
    %151 = vector.broadcast %1 : f32 to vector<16x9xf32>
    %152 = arith.mulf %151, %59 : vector<16x9xf32>
    %153 = arith.addf %150, %152 : vector<16x9xf32>
    %154 = arith.addf %153, %4 : vector<16x9xf32>
    %cst_51 = arith.constant 0.999994993 : f32
    %155 = vector.broadcast %cst_51 : f32 to vector<16x9xf32>
    %156 = arith.mulf %154, %155 : vector<16x9xf32>
    %c216 = arith.constant 216 : index
    %c0_52 = arith.constant 0 : index
    %157 = vector.load %arg1[%c216, %c0_52] : memref<376x32xf32, #tpu.memory_space<vmem>>, vector<9x32xf32>
    %cst_53 = arith.constant dense<0.000000e+00> : vector<16x32xf32>
    %158 = tpu.matmul %156, %157, %cst_53 {dimension_numbers = #tpu.dot_dimension_numbers<[1], [0], [0], [1], [0, 0, 1, 1], [], []>} : vector<16x9xf32>, vector<9x32xf32>, vector<16x32xf32> -> vector<16x32xf32>
    %c232 = arith.constant 232 : index
    %c0_54 = arith.constant 0 : index
    %159 = vector.load %arg1[%c232, %c0_54] : memref<376x32xf32, #tpu.memory_space<vmem>>, vector<1x32xf32>
    %160 = vector.broadcast %159 : vector<1x32xf32> to vector<16x32xf32>
    %161 = arith.addf %158, %160 : vector<16x32xf32>
    %cst_55 = arith.constant 0.000000e+00 : f32
    %162 = vector.broadcast %cst_55 : f32 to vector<16x32xf32>
    %163 = arith.maximumf %161, %162 : vector<16x32xf32>
    %cst_56 = arith.constant 0.999994993 : f32
    %164 = vector.broadcast %cst_56 : f32 to vector<16x32xf32>
    %165 = arith.mulf %163, %164 : vector<16x32xf32>
    %c240 = arith.constant 240 : index
    %c0_57 = arith.constant 0 : index
    %166 = vector.load %arg1[%c240, %c0_57] : memref<376x32xf32, #tpu.memory_space<vmem>>, vector<32x9xf32>
    %cst_58 = arith.constant dense<0.000000e+00> : vector<16x9xf32>
    %167 = tpu.matmul %165, %166, %cst_58 {dimension_numbers = #tpu.dot_dimension_numbers<[1], [0], [0], [1], [0, 0, 1, 1], [], []>} : vector<16x32xf32>, vector<32x9xf32>, vector<16x9xf32> -> vector<16x9xf32>
    %c272 = arith.constant 272 : index
    %c0_59 = arith.constant 0 : index
    %168 = vector.load %arg1[%c272, %c0_59] : memref<376x32xf32, #tpu.memory_space<vmem>>, vector<1x9xf32>
    %169 = vector.broadcast %168 : vector<1x9xf32> to vector<16x9xf32>
    %170 = arith.addf %167, %169 : vector<16x9xf32>
    %cst_60 = arith.constant 0.000000e+00 : f32
    %171 = vector.broadcast %cst_60 : f32 to vector<16x9xf32>
    %172 = arith.maximumf %170, %171 : vector<16x9xf32>
    %173 = arith.addf %156, %172 : vector<16x9xf32>
    %cst_61 = arith.constant 0.999994993 : f32
    %174 = vector.broadcast %cst_61 : f32 to vector<16x9xf32>
    %175 = arith.mulf %173, %174 : vector<16x9xf32>
    %c280 = arith.constant 280 : index
    %c0_62 = arith.constant 0 : index
    %176 = vector.load %arg1[%c280, %c0_62] : memref<376x32xf32, #tpu.memory_space<vmem>>, vector<9x9xf32>
    %cst_63 = arith.constant dense<0.000000e+00> : vector<16x9xf32>
    %177 = tpu.matmul %175, %176, %cst_63 {dimension_numbers = #tpu.dot_dimension_numbers<[1], [0], [0], [1], [0, 0, 1, 1], [], []>} : vector<16x9xf32>, vector<9x9xf32>, vector<16x9xf32> -> vector<16x9xf32>
    %c296 = arith.constant 296 : index
    %c0_64 = arith.constant 0 : index
    %178 = vector.load %arg1[%c296, %c0_64] : memref<376x32xf32, #tpu.memory_space<vmem>>, vector<1x9xf32>
    %179 = vector.broadcast %178 : vector<1x9xf32> to vector<16x9xf32>
    %180 = arith.addf %177, %179 : vector<16x9xf32>
    %c304 = arith.constant 304 : index
    %c0_65 = arith.constant 0 : index
    %181 = vector.load %arg1[%c304, %c0_65] : memref<376x32xf32, #tpu.memory_space<vmem>>, vector<9x9xf32>
    %cst_66 = arith.constant dense<0.000000e+00> : vector<16x9xf32>
    %182 = tpu.matmul %175, %181, %cst_66 {dimension_numbers = #tpu.dot_dimension_numbers<[1], [0], [0], [1], [0, 0, 1, 1], [], []>} : vector<16x9xf32>, vector<9x9xf32>, vector<16x9xf32> -> vector<16x9xf32>
    %cst_67 = arith.constant dense<0xFF800000> : vector<16xf32>
    %183 = vector.multi_reduction <maximumf>, %182, %cst_67 [1] : vector<16x9xf32> to vector<16xf32>
    %184 = vector.shape_cast %183 : vector<16xf32> to vector<16x1xf32>
    %185 = vector.broadcast %184 : vector<16x1xf32> to vector<16x9xf32>
    %186 = arith.subf %182, %185 : vector<16x9xf32>
    %187 = math.exp %186 : vector<16x9xf32>
    %cst_68 = arith.constant dense<0.000000e+00> : vector<16xf32>
    %188 = vector.multi_reduction <add>, %187, %cst_68 [1] : vector<16x9xf32> to vector<16xf32>
    %189 = vector.shape_cast %188 : vector<16xf32> to vector<16x1xf32>
    %190 = tpu.reciprocal %189 : vector<16x1xf32> -> vector<16x1xf32>
    %191 = vector.broadcast %190 : vector<16x1xf32> to vector<16x9xf32>
    %192 = arith.mulf %187, %191 : vector<16x9xf32>
    %193 = arith.mulf %180, %192 : vector<16x9xf32>
    %194 = vector.shape_cast %193 : vector<16x9xf32> to vector<2x8x9xf32>
    %cst_69 = arith.constant dense<0.000000e+00> : vector<2x8xf32>
    %195 = vector.multi_reduction <add>, %194, %cst_69 [2] : vector<2x8x9xf32> to vector<2x8xf32>
    %196 = vector.broadcast %2 : f32 to vector<2x8xf32>
    %197 = arith.mulf %196, %195 : vector<2x8xf32>
    %c24 = arith.constant 24 : index
    %c0_70 = arith.constant 0 : index
    %198 = vector.load %arg1[%c24, %c0_70] : memref<376x32xf32, #tpu.memory_space<vmem>>, vector<2x8xf32>
    %199 = vector.broadcast %3 : f32 to vector<2x8xf32>
    %200 = arith.mulf %199, %198 : vector<2x8xf32>
    %201 = arith.addf %197, %200 : vector<2x8xf32>
    %c320 = arith.constant 320 : index
    %c0_71 = arith.constant 0 : index
    %202 = vector.load %arg1[%c320, %c0_71] : memref<376x32xf32, #tpu.memory_space<vmem>>, vector<8x16xf32>
    %cst_72 = arith.constant dense<0.000000e+00> : vector<2x16xf32>
    %203 = tpu.matmul %201, %202, %cst_72 {dimension_numbers = #tpu.dot_dimension_numbers<[1], [0], [0], [1], [0, 0, 1, 1], [], []>} : vector<2x8xf32>, vector<8x16xf32>, vector<2x16xf32> -> vector<2x16xf32>
    %c328 = arith.constant 328 : index
    %c0_73 = arith.constant 0 : index
    %204 = vector.load %arg1[%c328, %c0_73] : memref<376x32xf32, #tpu.memory_space<vmem>>, vector<1x16xf32>
    %205 = vector.broadcast %204 : vector<1x16xf32> to vector<2x16xf32>
    %206 = arith.addf %203, %205 : vector<2x16xf32>
    %cst_74 = arith.constant 0.000000e+00 : f32
    %207 = vector.broadcast %cst_74 : f32 to vector<2x16xf32>
    %208 = arith.maximumf %206, %207 : vector<2x16xf32>
    %cst_75 = arith.constant 0.999994993 : f32
    %209 = vector.broadcast %cst_75 : f32 to vector<2x16xf32>
    %210 = arith.mulf %208, %209 : vector<2x16xf32>
    %c336 = arith.constant 336 : index
    %c0_76 = arith.constant 0 : index
    %211 = vector.load %arg1[%c336, %c0_76] : memref<376x32xf32, #tpu.memory_space<vmem>>, vector<16x8xf32>
    %cst_77 = arith.constant dense<0.000000e+00> : vector<2x8xf32>
    %212 = tpu.matmul %210, %211, %cst_77 {dimension_numbers = #tpu.dot_dimension_numbers<[1], [0], [0], [1], [0, 0, 1, 1], [], []>} : vector<2x16xf32>, vector<16x8xf32>, vector<2x8xf32> -> vector<2x8xf32>
    %c352 = arith.constant 352 : index
    %c0_78 = arith.constant 0 : index
    %213 = vector.load %arg1[%c352, %c0_78] : memref<376x32xf32, #tpu.memory_space<vmem>>, vector<1x8xf32>
    %214 = vector.broadcast %213 : vector<1x8xf32> to vector<2x8xf32>
    %215 = arith.addf %212, %214 : vector<2x8xf32>
    %cst_79 = arith.constant 0.000000e+00 : f32
    %216 = vector.broadcast %cst_79 : f32 to vector<2x8xf32>
    %217 = arith.maximumf %215, %216 : vector<2x8xf32>
    %cst_80 = arith.constant 0.999994993 : f32
    %218 = vector.broadcast %cst_80 : f32 to vector<2x8xf32>
    %219 = arith.mulf %217, %218 : vector<2x8xf32>
    %c360 = arith.constant 360 : index
    %c0_81 = arith.constant 0 : index
    %220 = vector.load %arg1[%c360, %c0_81] : memref<376x32xf32, #tpu.memory_space<vmem>>, vector<8x4xf32>
    %cst_82 = arith.constant dense<0.000000e+00> : vector<2x4xf32>
    %221 = tpu.matmul %219, %220, %cst_82 {dimension_numbers = #tpu.dot_dimension_numbers<[1], [0], [0], [1], [0, 0, 1, 1], [], []>} : vector<2x8xf32>, vector<8x4xf32>, vector<2x4xf32> -> vector<2x4xf32>
    %c368 = arith.constant 368 : index
    %c0_83 = arith.constant 0 : index
    %222 = vector.load %arg1[%c368, %c0_83] : memref<376x32xf32, #tpu.memory_space<vmem>>, vector<1x4xf32>
    %223 = vector.broadcast %222 : vector<1x4xf32> to vector<2x4xf32>
    %224 = arith.addf %221, %223 : vector<2x4xf32>
    %225 = math.tanh %224 : vector<2x4xf32>
    %c0_84 = arith.constant 0 : index
    %c0_85 = arith.constant 0 : index
    %226 = vector.load %arg2[%c0_84, %c0_85] : memref<2x4xf32, #tpu.memory_space<vmem>>, vector<2x4xf32>
    tpu.vector_store %arg2[%c0_84, %c0_85], %225 {strides = array<i32>} : memref<2x4xf32, #tpu.memory_space<vmem>>, vector<2x4xf32>,
    return
  }
}

</mosaic_0001>

<bundles_post_ra>
// kernel: acinet_forward.1
= control target key start
LH: loop header
LB: loop body
LE: loop exit
PB: predicated region body
PF: predicated region fallthrough
CT: control target
= control target key end

     0   :  { %7 = vsyncpa [#allocation4], 0  ;;  %s4116_s0 = inlined_call_operand.vmem [shape: f32[4], index: 0, kind: input, shape index: {}]   ;;  %s4117_s1 = inlined_call_operand.vmem [shape: f32[376,32], index: 1, kind: input, shape index: {}]   ;;  %s4118_s2 = inlined_call_operand.hbm [shape: f32[2,4], index: 2, kind: output, shape index: {}]  }
   0x1   :  { %8 = vsyncpa [#allocation3], 0  ;;  %s15_s11 = sshll.u32 %s4116_s0, 4  ;;  %s16_s11 = int_to_ptr.vmem [resolvable:$true] %s15_s11 }
   0x2   :  { %s3654_s12 = scalar_lea.vmem %s16_s11, 16  ;;  %p3659_p1 = scmp.lt.s32.totalorder %s16_s11, %s16_s11 }
   0x3   :  { %p3655_p0 = scmp.ne.s32.totalorder %s16_s11, %s3654_s12  ;;  %p3660_p2 = scmp.lt.s32.totalorder %s3654_s12, %s3654_s12 }
   0x5   :  { %p3661_p3 = por %p3660_p2, %p3659_p1 }
   0x7   :  { %p3662_p4 = pnand %p3661_p3, %p3655_p0 }
   0x9   :  { %3665 = shalt.err (!%p3662_p4)
}
   0xa   :  { %s3692_s13 = smov [#allocation2]  }
   0xb   :  { %18 = dma.vmem_to_smem %s16_s11, 16, %s3692_s13, [#allocation4]  }
   0xc   :  { %3688 = dma.done.wait [#allocation4], 16  }
   0xd   :  { %3689 = vsyncadd [#allocation4], 4294967280 }
   0xe   :  { %24 = sfence }
   0xf   :  { %v31_v0 = vld [vmem:[%s4117_s1 + $0x20] sm:$0xff]  ;;  %v32_v1 = vld [vmem:[%s4117_s1 + $0x28] sm:$0x1]  ;;  %vm40_vm0 = vcmask 1040384   ;;  %vm3693_vm1 = vmmov 1   ;;  %vm33_vm3 = vcmask 72704  }
  0x10   :  { %v3728_v2 = vld [vmem:[%s4117_s1] sm:$0xff]  ;;  %v3504_v3 = vpack.c.bf16 %v32_v1, %v31_v0  ;;  %vm3730_vm2 = vmpackc.low %vm40_vm0, %vm3693_vm1  ;;  %v3743_v5 = vld [vmem:[%s4117_s1 + $0x8] sm:$0xff]  ;;  %s3694_s25 = smov 110   ;;  %s3695_s26 = smov 119   ;;  %vm330_vm4 = vcmask 1042432   ;;  %vm323_vm5 = vcmask 23552  }
  0x11   :  { %3299 = vmatprep.mubr.msk.f32.mxu0 %vm33_vm3, %v3728_v2  ;;  %v119_v6 = vld [vmem:[%s4117_s1 + $0x40] sm:$0xff]  ;;  %v120_v7 = vld [vmem:[%s4117_s1 + $0x48] sm:$0x1]  ;;  %v121_v17 = vld [vmem:[%s4117_s1 + $0x50] sm:$0x7]  ;;  %v3696_v52 = vmov 0.0  }
  0x12   :  { %3506 = vmatprep.subr.msk.bf16.mxu0 %vm3730_vm2, %v3504_v3  ;;  %v3510_v8 = vpack.c.bf16 %v120_v7, %v119_v6  ;;  %v504_v48 = vld [vmem:[%s4117_s1 + $0x30] sm:$0xff]  ;;  %v505_v49 = vld [vmem:[%s4117_s1 + $0x38] sm:$0x1]  ;;  %vm3697_vm6 = vmmov 0   ;;  %v761_v6 = vld [vmem:[%s4117_s1 + $0x88] sm:$0xff]  ;;  %vm597_vm7 = vcmask 64512  }
  0x13   :  { %3509 = vmatpush3.bf16.msk.msra.mxu0 %vm3730_vm2, %v3504_v3  ;;  %v3522_v50 = vpack.c.bf16 %v505_v49, %v504_v48  ;;  %v596_v51 = vld [vmem:[%s4117_s1 + $0xd0] sm:$0xff]  ;;  %v675_v1 = vld [vmem:[%s4117_s1 + $0x58] sm:$0xff]  ;;  %v676_v3 = vld [vmem:[%s4117_s1 + $0x60] sm:$0x1]  ;;  %s25_s17 = sld [smem:[#allocation2]]  ;;  %vm2508_vm8 = vcmask 261120  }
  0x14   :  { %3512 = vmatprep.subr.msk.bf16.mxu1 %vm3730_vm2, %v3510_v8  ;;  %3518 = vmatprep.subr.msk.bf16.mxu0 %vm3730_vm2, %v3510_v8  ;;  %v595_v7 = vld [vmem:[%s4117_s1 + $0x10] sm:$0xff]  ;;  %s3104_s13 = sld [smem:[#allocation2 + $0x3]]  ;;  %s3103_s16 = sld [smem:[#allocation2 + $0x2]]  ;;  %vm2846_vm9 = vcmask 1041409   ;;  %vm2929_vm10 = vcmask 130048   ;;  %vm3085_vm11 = vcmask 25600  }
  0x15   :  { %3515 = vmatpush3.bf16.msk.msra.mxu1 %vm3730_vm2, %v3510_v8  ;;  %v1168_v48 = vld [vmem:[%s4117_s1 + $0x70] sm:$0x1]  ;;  %s3700_s30 = smov [#allocation5]  }
  0x16   :  { %3300 = vmatmul.mubr.msk.f32.vlgmr.msra.gmra.mrb[0].mxu0 %vm33_vm3, %v3743_v5  ;;  %3316 = vmatprep.subr.msk.mxu1 %vm330_vm4, %v121_v17  ;;  %s3093_s3 = sshll.u32 %s3700_s30, 4  ;;  %s3094_s3 = int_to_ptr.vmem [resolvable:$true] %s3093_s3 }
  0x17   :  { %3521 = vmatpush3.bf16.msk.msra.mxu0 %vm3730_vm2, %v3510_v8  ;;  %v3528_v8 = vpack.c.bf16 %v676_v3, %v675_v1  ;;  %s3666_s4 = scalar_lea.vmem %s3094_s3, 32  ;;  %p3671_p6 = scmp.lt.s32.totalorder %s3094_s3, %s3094_s3 }
  0x18   :  { %3321 = vmatprep.subr.msk.mxu0 %vm330_vm4, %v121_v17  ;;  %p3667_p5 = scmp.ne.s32.totalorder %s3094_s3, %s3666_s4  ;;  %p3672_p7 = scmp.lt.s32.totalorder %s3666_s4, %s3666_s4 }
  0x19   :  { %s673_s0 = ssub.f32 1.0, %s25_s17  ;;  %s594_s18 = smul.f32 0.35355338, %s25_s17 }
  0x1a   :  { %p3673_p8 = por %p3672_p7, %p3671_p6 }
  0x1b   :  { %s674_s19 = smul.f32 0.57735026, %s673_s0  ;;  %s3102_s0 = sld [smem:[#allocation2 + $0x1]] }
  0x1c   :  { %p3674_p9 = pnand %p3673_p8, %p3667_p5 }
  0xe9   :  { %v3301_v9 = vpop.f32.mrb[0].mxu0 }
  0xea   :  { %v110_v10 = vpop.f32.mrb[1].mxu0 }
  0xeb   :  { %409 = vrot.lane.b32.xlu1 %v110_v10, %s3694_s25  ;;  %123 = vrot.lane.b32.xlu0 %v110_v10, %s3695_s26 }
  0xef   :  { %497 = vrot.lane.b32.xlu1 %v3301_v9, %s3694_s25  ;;  %215 = vrot.lane.b32.xlu0 %v3301_v9, %s3695_s26 }
 0x15d   :  { %v124_v11 = vpop.permute.xlu0 %123  ;;  %v410_v53 = vpop.permute.xlu1 %409 }
 0x15e   :  { %v127_v12 = vmul.f32 %v3301_v9, %v124_v11  ;;  %v126_v13 = vmul.f32 %v124_v11, %v110_v10 }
 0x160   :  { %3306 = vmatprep.mubr.msk.f32.mxu1 %vm33_vm3, %v126_v13 }
 0x161   :  { %3307 = vmatmul.mubr.msk.f32.vlgmr.msra.gmra.mrb[0].mxu1 %vm33_vm3, %v127_v12  ;;  %v216_v14 = vpop.permute.xlu0 %215  ;;  %v498_v54 = vpop.permute.xlu1 %497 }
 0x162   :  { %v218_v15 = vmul.f32 %v216_v14, %v110_v10  ;;  %v219_v16 = vmul.f32 %v3301_v9, %v216_v14  ;;  %3317 = vmatpush3.msk.msra.mxu1 %vm330_vm4, %v121_v17  ;;  %v762_v9 = vld [vmem:[%s4117_s1 + $0x90] sm:$0x1] }
 0x163   :  { %3524 = vmatprep.subr.msk.bf16.mxu1 %vm3730_vm2, %v3522_v50  ;;  %v3534_v10 = vpack.c.bf16 %v762_v9, %v761_v6 }
 0x164   :  { %3313 = vmatprep.mubr.msk.f32.mxu0 %vm33_vm3, %v218_v15 }
 0x165   :  { %3314 = vmatmul.mubr.msk.f32.vlgmr.msra.gmra.mrb[2].mxu0 %vm33_vm3, %v219_v16 }
 0x166   :  { %3322 = vmatpush3.msk.msra.mxu0 %vm330_vm4, %v121_v17 }
 0x167   :  { %3333 = vmatprep.subr.mxu0 %v3696_v52 }
 0x234   :  { %v3308_v18 = vpop.f32.mrb[0].mxu1 }
 0x235   :  { %v203_v19 = vpop.f32.mrb[1].mxu1  ;;  %v213_v21 = vmul.f32 0.57735026, %v3308_v18 }
 0x236   :  { %v212_v24 = vmul.f32 0.57735026, %v203_v19 }
 0x238   :  { %v3315_v20 = vpop.f32.mrb[2].mxu0 }
 0x239   :  { %v302_v22 = vmul.f32 0.57735026, %v3315_v20  ;;  %v292_v23 = vpop.f32.mrb[3].mxu0 }
 0x23a   :  { %v301_v25 = vmul.f32 0.57735026, %v292_v23 }
 0x23b   :  { %v304_v26 = vmax.f32 %v213_v21, %v302_v22 }
 0x23c   :  { %v303_v27 = vmax.f32 %v212_v24, %v301_v25 }
 0x23d   :  { %v306_v28 = vsub.f32 %v213_v21, %v304_v26  ;;  %v312_v29 = vsub.f32 %v302_v22, %v304_v26  ;;  %v671_v21 = vstv %s594_s18  ;;  %v3854_v22 = vstv %s674_s19  ;;  %s2391_s18 = ssub.f32 1.0, %s3102_s0 }
 0x23e   :  { %v305_v30 = vsub.f32 %v212_v24, %v303_v27  ;;  %v311_v31 = vsub.f32 %v301_v25, %v303_v27 }
 0x23f   :  { %v309_v32 = vmul.f32 1.442695, %v306_v28  ;;  %v315_v33 = vmul.f32 1.442695, %v312_v29 }
 0x240   :  { %v307_v34 = vmul.f32 1.442695, %v305_v30  ;;  %v313_v35 = vmul.f32 1.442695, %v311_v31 }
 0x241   :  { %3608 = vpow2.f32 %v309_v32 }
 0x242   :  { %3610 = vpow2.f32 %v315_v33 }
 0x243   :  { %3612 = vpow2.f32 %v307_v34 }
 0x244   :  { %3614 = vpow2.f32 %v313_v35 }
 0x24b   :  { %v3609_v36 = vpop.eup %3608 }
 0x24c   :  { %v3611_v37 = vpop.eup %3610 }
 0x24d   :  { %v3613_v38 = vpop.eup %3612  ;;  %v318_v39 = vadd.f32 %v3611_v37, %v3609_v36 }
 0x24e   :  { %v3615_v40 = vpop.eup %3614 }
 0x24f   :  { %3616 = vrcp.f32 %v318_v39  ;;  %v317_v41 = vadd.f32 %v3615_v40, %v3613_v38 }
 0x251   :  { %3618 = vrcp.f32 %v317_v41 }
 0x259   :  { %v3617_v42 = vpop.eup %3616 }
 0x25a   :  { %v322_v43 = vmul.f32 %v3617_v42, %v3609_v36  ;;  %v415_v44 = vmul.f32 %v3617_v42, %v3611_v37 }
 0x25b   :  { %v3619_v45 = vpop.eup %3618 }
 0x25c   :  { %v321_v46 = vmul.f32 %v3619_v45, %v3613_v38  ;;  %v414_v47 = vmul.f32 %v3619_v45, %v3615_v40  ;;  %v1248_v45 = vld [vmem:[%s4117_s1 + $0xa0] sm:$0x1] }
 0x25e   :  { %3318 = vmatprep.mubr.msk.f32.mxu1 %vm323_vm5, %v321_v46  ;;  %3323 = vmatprep.mubr.msk.f32.mxu0 %vm323_vm5, %v414_v47  ;;  %v1167_v47 = vld [vmem:[%s4117_s1 + $0x68] sm:$0xff] }
 0x25f   :  { %3319 = vmatmul.mubr.msk.f32.vlgmr.msra.gmra.mrb[2].mxu1 %vm323_vm5, %v322_v43  ;;  %3324 = vmatmul.mubr.msk.f32.vlgmr.msra.gmra.mrb[4].mxu0 %vm323_vm5, %v415_v44  ;;  %v1247_v44 = vld [vmem:[%s4117_s1 + $0x98] sm:$0xff]  ;;  %v3540_v49 = vpack.c.bf16 %v1168_v48, %v1167_v47 }
 0x260   :  { %3527 = vmatpush3.bf16.msk.msra.mxu1 %vm3730_vm2, %v3522_v50  ;;  %3335 = vmatprep.mubr.msk.f32.mxu0 %vm3697_vm6, %v3696_v52  ;;  %v3546_v46 = vpack.c.bf16 %v1248_v45, %v1247_v44 }
 0x261   :  { %3334 = vmatpush3.msra.mxu0 %v596_v51  ;;  %3530 = vmatprep.subr.msk.bf16.mxu1 %vm3730_vm2, %v3528_v8 }
 0x262   :  { %3536 = vmatprep.subr.msk.bf16.mxu0 %vm3730_vm2, %v3534_v10 }
 0x263   :  { %3336 = vmatmul.mubr.msk.f32.vlgmr.msra.gmra.mrb[6].mxu0 %vm597_vm7, %v595_v7 }
 0x264   :  { %3539 = vmatpush3.bf16.msk.msra.mxu0 %vm3730_vm2, %v3534_v10 }
 0x265   :  { %3357 = vmatprep.subr.mxu0 %v3696_v52 }
 0x332   :  { %v3320_v55 = vpop.f32.mrb[2].mxu1  ;;  %v3325_v56 = vpop.f32.mrb[4].mxu0 }
 0x333   :  { %v413_v57 = vmul.f32 %v3320_v55, %v410_v53  ;;  %v501_v58 = vmul.f32 %v3325_v56, %v498_v54  ;;  %v400_v59 = vpop.f32.mrb[3].mxu1  ;;  %v488_v60 = vpop.f32.mrb[5].mxu0 }
 0x334   :  { %v412_v61 = vmul.f32 %v410_v53, %v400_v59  ;;  %v500_v62 = vmul.f32 %v498_v54, %v488_v60 }
 0x335   :  { %v503_v63 = vadd.f32 %v501_v58, %v413_v57 }
 0x336   :  { %v502_v0 = vadd.f32 %v500_v62, %v412_v61  ;;  %v667_v15 = vpop.f32.mrb[6].mxu0 }
 0x337   :  { %v3337_v16 = vpop.f32.mrb[7].mxu0  ;;  %v3856_v24 = vmul.f32 %v671_v21, %v667_v15 }
 0x338   :  { %3330 = vmatprep.mubr.msk.f32.mxu1 %vm33_vm3, %v502_v0 }
 0x339   :  { %3331 = vmatmul.mubr.msk.f32.vlgmr.msra.gmra.mrb[4].mxu1 %vm33_vm3, %v503_v63 }
 0x33a   :  { %3533 = vmatpush3.bf16.msk.msra.mxu1 %vm3730_vm2, %v3528_v8 }
 0x33b   :  { %3352 = vmatprep.subr.mxu1 %v3696_v52 }
 0x40c   :  { %v3820_v11 = vpop.f32.mrb[4].mxu1 }
 0x40d   :  { %v3822_v12 = vpop.f32.mrb[5].mxu1  ;;  %v3830_v14 = vadd.f32 %v3820_v11, %v3743_v5 }
 0x40e   :  { %v3826_v13 = vadd.f32 %v3822_v12, %v3728_v2 }
 0x410   :  { %3342 = vmatprep.mubr.msk.f32.mxu1 %vm33_vm3, %v3826_v13  ;;  %3349 = vmatprep.mubr.msk.f32.mxu0 %vm33_vm3, %v3826_v13 }
 0x411   :  { %3343 = vmatmul.mubr.msk.f32.vlgmr.msra.gmra.mrb[6].mxu1 %vm33_vm3, %v3830_v14  ;;  %3350 = vmatmul.mubr.msk.f32.vlgmr.msra.gmra.mrb[8].mxu0 %vm33_vm3, %v3830_v14 }
 0x412   :  { %3359 = vmatprep.mubr.msk.f32.mxu0 %vm3697_vm6, %v3696_v52  ;;  %3354 = vmatprep.mubr.msk.f32.mxu1 %vm3697_vm6, %v3696_v52 }
 0x4e4   :  { %v3344_v17 = vpop.f32.mrb[6].mxu1  ;;  %v3351_v18 = vpop.f32.mrb[8].mxu0 }
 0x4e5   :  { %v752_v19 = vpop.f32.mrb[7].mxu1  ;;  %v832_v20 = vpop.f32.mrb[9].mxu0  ;;  %3358 = vmatpush3.xpose.msk.msra.mxu0 %vm323_vm5, %v3351_v18 }
 0x4e6   :  { %3353 = vmatpush3.xpose.msk.msra.mxu1 %vm323_vm5, %v832_v20  ;;  %3367 = vmatprep.subr.mxu0 %v3696_v52 }
 0x4e7   :  { %3362 = vmatprep.subr.mxu1 %v3696_v52 }
 0x4e8   :  { %3360 = vmatmul.mubr.msk.f32.vlgmr.msra.gmra.mrb[10].mxu0 %vm323_vm5, %v3344_v17 }
 0x4e9   :  { %3355 = vmatmul.mubr.msk.f32.vlgmr.msra.gmra.mrb[8].mxu1 %vm323_vm5, %v752_v19  ;;  %3368 = vmatpush3.msra.mxu0 %v3344_v17 }
 0x4ea   :  { %3363 = vmatpush3.msra.mxu1 %v752_v19  ;;  %3369 = vmatprep.mubr.msk.f32.mxu0 %vm3697_vm6, %v3696_v52 }
 0x4eb   :  { %3364 = vmatprep.mubr.msk.f32.mxu1 %vm3697_vm6, %v3696_v52  ;;  %3548 = vmatprep.subr.msk.bf16.mxu0 %vm3730_vm2, %v3546_v46 }
 0x4ec   :  { %3542 = vmatprep.subr.msk.bf16.mxu1 %vm3730_vm2, %v3540_v49 }
 0x5bb   :  { %v989_v23 = vpop.f32.mrb[10].mxu0 }
 0x5bc   :  { %v995_v25 = vmul.f32 %v3854_v22, %v989_v23  ;;  %v913_v26 = vpop.f32.mrb[8].mxu1  ;;  %v3361_v27 = vpop.f32.mrb[11].mxu0 }
 0x5bd   :  { %v994_v28 = vmul.f32 %v3854_v22, %v913_v26  ;;  %v3356_v29 = vpop.f32.mrb[9].mxu1 }
 0x5be   :  { %v997_v30 = vadd.f32 %v995_v25, %v3856_v24 }
 0x5bf   :  { %v996_v31 = vadd.f32 %v994_v28, %v3856_v24 }
 0x5c0   :  { %v1001_v32 = vsel %vm597_vm7, %v997_v30, -inf }
 0x5c1   :  { %1002 = vmax.xlane.f32.xlu0 %v1001_v32  ;;  %v998_v33 = vsel %vm597_vm7, %v996_v31, -inf }
 0x5c2   :  { %999 = vmax.xlane.f32.xlu1 %v998_v33  ;;  %v1651_v33 = vld [vmem:[%s4117_s1 + $0xc0] sm:$0x7] }
 0x64e   :  { %v1003_v34 = vpop.xlane.xlu0 %1002 }
 0x64f   :  { %v1005_v35 = vsub.f32 %v997_v30, %v1003_v34  ;;  %v1000_v36 = vpop.xlane.xlu1 %999  ;;  %v1820_v30 = vld [vmem:[%s4117_s1 + $0x78] sm:$0xff] }
 0x650   :  { %v1004_v37 = vsub.f32 %v996_v31, %v1000_v36  ;;  %v1821_v31 = vld [vmem:[%s4117_s1 + $0x80] sm:$0x1]  ;;  %v1900_v36 = vld [vmem:[%s4117_s1 + $0xa8] sm:$0xff] }
 0x651   :  { %v1008_v38 = vmul.f32 1.442695, %v1005_v35  ;;  %v3552_v32 = vpack.c.bf16 %v1821_v31, %v1820_v30 }
 0x652   :  { %v1006_v39 = vmul.f32 1.442695, %v1004_v37  ;;  %v1901_v37 = vld [vmem:[%s4117_s1 + $0xb0] sm:$0x1] }
 0x653   :  { %3620 = vpow2.f32 %v1008_v38 }
 0x654   :  { %3622 = vpow2.f32 %v1006_v39 }
 0x65d   :  { %v3621_v40 = vpop.eup %3620 }
 0x65e   :  { %v1013_v41 = vsel %vm597_vm7, %v3621_v40, 0.0  ;;  %v3623_v42 = vpop.eup %3622 }
 0x65f   :  { %1014 = vadd.xlane.f32.xlu0 %v1013_v41  ;;  %v1010_v43 = vsel %vm597_vm7, %v3623_v42, 0.0  ;;  %v3558_v41 = vpack.c.bf16 %v1901_v37, %v1900_v36 }
 0x663   :  { %1011 = vadd.xlane.f32.xlu0 %v1010_v43  ;;  %v1166_v43 = vld [vmem:[%s4117_s1 + $0xb8] sm:$0x7] }
 0x6ec   :  { %v1015_v50 = vpop.xlane.xlu0 %1014 }
 0x6ed   :  { %3624 = vrcp.f32 %v1015_v50 }
 0x6f0   :  { %v1012_v51 = vpop.xlane.xlu0 %1011 }
 0x6f1   :  { %3626 = vrcp.f32 %v1012_v51 }
 0x6f7   :  { %v3625_v53 = vpop.eup %3624 }
 0x6f8   :  { %v1019_v54 = vmul.f32 %v3625_v53, %v3621_v40 }
 0x6fa   :  { %3370 = vmatmul.mubr.msk.f32.vlgmr.msra.gmra.mrb[12].mxu0 %vm597_vm7, %v1019_v54 }
 0x6fb   :  { %v3627_v55 = vpop.eup %3626  ;;  %3551 = vmatpush3.bf16.msk.msra.mxu0 %vm3730_vm2, %v3546_v46  ;;  %3383 = vmatprep.mubr.msk.f32.mxu0 %vm33_vm3, %v3826_v13 }
 0x6fc   :  { %v1018_v56 = vmul.f32 %v3627_v55, %v3623_v42  ;;  %3391 = vmatprep.subr.mxu0 %v3696_v52 }
 0x6fe   :  { %3365 = vmatmul.mubr.msk.f32.vlgmr.msra.gmra.mrb[10].mxu1 %vm597_vm7, %v1018_v56  ;;  %3384 = vmatmul.mubr.msk.f32.vlgmr.msra.gmra.mrb[14].mxu0 %vm33_vm3, %v3830_v14 }
 0x6ff   :  { %3545 = vmatpush3.bf16.msk.msra.mxu1 %vm3730_vm2, %v3540_v49  ;;  %3376 = vmatprep.mubr.msk.f32.mxu1 %vm33_vm3, %v3826_v13 }
 0x700   :  { %3386 = vmatprep.subr.mxu1 %v3696_v52  ;;  %3393 = vmatprep.mubr.msk.f32.mxu0 %vm3697_vm6, %v3696_v52 }
 0x702   :  { %3377 = vmatmul.mubr.msk.f32.vlgmr.msra.gmra.mrb[12].mxu1 %vm33_vm3, %v3830_v14 }
 0x703   :  { %3388 = vmatprep.mubr.msk.f32.mxu1 %vm3697_vm6, %v3696_v52 }
 0x7cd   :  { %v3902_v57 = vpop.f32.mrb[12].mxu0 }
 0x7ce   :  { %v3371_v58 = vpop.f32.mrb[13].mxu0 }
 0x7d1   :  { %v3904_v59 = vpop.f32.mrb[10].mxu1  ;;  %v3385_v60 = vpop.f32.mrb[14].mxu0 }
 0x7d2   :  { %v3366_v61 = vpop.f32.mrb[11].mxu1  ;;  %v1318_v62 = vpop.f32.mrb[15].mxu0  ;;  %3392 = vmatpush3.xpose.msk.msra.mxu0 %vm323_vm5, %v3385_v60 }
 0x7d3   :  { %3387 = vmatpush3.xpose.msk.msra.mxu1 %vm323_vm5, %v1318_v62  ;;  %3401 = vmatprep.subr.mxu0 %v3696_v52 }
 0x7d4   :  { %3396 = vmatprep.subr.mxu1 %v3696_v52 }
 0x7d5   :  { %v3378_v63 = vpop.f32.mrb[12].mxu1 }
 0x7d6   :  { %v1238_v0 = vpop.f32.mrb[13].mxu1  ;;  %3394 = vmatmul.mubr.msk.f32.vlgmr.msra.gmra.mrb[16].mxu0 %vm323_vm5, %v3378_v63 }
 0x7d7   :  { %3402 = vmatpush3.msra.mxu0 %v3378_v63  ;;  %3389 = vmatmul.mubr.msk.f32.vlgmr.msra.gmra.mrb[14].mxu1 %vm323_vm5, %v1238_v0 }
 0x7d8   :  { %3397 = vmatpush3.msra.mxu1 %v1238_v0  ;;  %3403 = vmatprep.mubr.msk.f32.mxu0 %vm3697_vm6, %v3696_v52 }
 0x7d9   :  { %3398 = vmatprep.mubr.msk.f32.mxu1 %vm3697_vm6, %v3696_v52  ;;  %3554 = vmatprep.subr.msk.bf16.mxu0 %vm3730_vm2, %v3552_v32 }
 0x7da   :  { %3406 = vmatprep.subr.msk.mxu1 %vm330_vm4, %v1651_v33 }
 0x8a9   :  { %v1475_v1 = vpop.f32.mrb[16].mxu0 }
 0x8aa   :  { %v1480_v3 = vmul.f32 %v1475_v1, %v3854_v22  ;;  %v1399_v6 = vpop.f32.mrb[14].mxu1  ;;  %v3395_v7 = vpop.f32.mrb[17].mxu0 }
 0x8ab   :  { %v1479_v8 = vmul.f32 %v1399_v6, %v3854_v22  ;;  %v3390_v9 = vpop.f32.mrb[15].mxu1 }
 0x8ac   :  { %v1482_v10 = vadd.f32 %v1480_v3, %v3856_v24 }
 0x8ad   :  { %v1481_v15 = vadd.f32 %v1479_v8, %v3856_v24 }
 0x8ae   :  { %v1486_v16 = vsel %vm597_vm7, %v1482_v10, -inf }
 0x8af   :  { %1487 = vmax.xlane.f32.xlu0 %v1486_v16  ;;  %v1483_v17 = vsel %vm597_vm7, %v1481_v15, -inf }
 0x8b0   :  { %1484 = vmax.xlane.f32.xlu1 %v1483_v17 }
 0x93c   :  { %v1488_v18 = vpop.xlane.xlu0 %1487 }
 0x93d   :  { %v1490_v19 = vsub.f32 %v1482_v10, %v1488_v18  ;;  %v1485_v20 = vpop.xlane.xlu1 %1484  ;;  %v2304_v18 = vld [vmem:[%s4117_s1 + $0xc8] sm:$0x7] }
 0x93e   :  { %v1489_v21 = vsub.f32 %v1481_v15, %v1485_v20 }
 0x93f   :  { %v1493_v23 = vmul.f32 1.442695, %v1490_v19 }
 0x940   :  { %v1491_v25 = vmul.f32 1.442695, %v1489_v21 }
 0x941   :  { %3628 = vpow2.f32 %v1493_v23 }
 0x942   :  { %3630 = vpow2.f32 %v1491_v25  ;;  %v2404_v25 = vld [vmem:[%s4117_s1 + $0xd8] sm:$0xff] }
 0x94b   :  { %v3629_v26 = vpop.eup %3628 }
 0x94c   :  { %v3631_v27 = vpop.eup %3630  ;;  %v1498_v28 = vsel %vm597_vm7, %v3629_v26, 0.0 }
 0x94d   :  { %1499 = vadd.xlane.f32.xlu0 %v1498_v28  ;;  %v1495_v29 = vsel %vm597_vm7, %v3631_v27, 0.0  ;;  %v2395_v28 = vstv %s3102_s0 }
 0x94e   :  { %1496 = vadd.xlane.f32.xlu1 %v1495_v29  ;;  %v2392_v29 = vstv %s2391_s18  ;;  %v2397_v31 = vmul.f32 %v3820_v11, %v2395_v28  ;;  %v2499_v11 = vld [vmem:[%s4117_s1 + $0xf0] sm:$0xff] }
 0x9da   :  { %v1500_v34 = vpop.xlane.xlu0 %1499 }
 0x9db   :  { %3632 = vrcp.f32 %v1500_v34  ;;  %v1497_v35 = vpop.xlane.xlu1 %1496  ;;  %v2396_v34 = vmul.f32 %v2395_v28, %v3822_v12  ;;  %v2500_v12 = vld [vmem:[%s4117_s1 + $0xf8] sm:$0xff] }
 0x9dc   :  { %3634 = vrcp.f32 %v1497_v35 }
 0x9e5   :  { %v3633_v38 = vpop.eup %3632 }
 0x9e6   :  { %v3635_v39 = vpop.eup %3634  ;;  %v1504_v40 = vmul.f32 %v3633_v38, %v3629_v26  ;;  %v2405_v26 = vld [vmem:[%s4117_s1 + $0xe0] sm:$0x1] }
 0x9e7   :  { %v1503_v42 = vmul.f32 %v3635_v39, %v3631_v27  ;;  %v3564_v27 = vpack.c.bf16 %v2405_v26, %v2404_v25 }
 0x9e8   :  { %3404 = vmatmul.mubr.msk.f32.vlgmr.msra.gmra.mrb[18].mxu0 %vm597_vm7, %v1504_v40 }
 0x9e9   :  { %3399 = vmatmul.mubr.msk.f32.vlgmr.msra.gmra.mrb[16].mxu1 %vm597_vm7, %v1503_v42  ;;  %3557 = vmatpush3.bf16.msk.msra.mxu0 %vm3730_vm2, %v3552_v32  ;;  %v3570_v42 = vpack.c.bf16 %v2500_v12, %v2499_v11  ;;  %v2800_v11 = vld [vmem:[%s4117_s1 + $0x18] sm:$0x3]  ;;  %v2801_v12 = vstv %s3104_s13 }
 0x9ea   :  { %3420 = vmatprep.mubr.msk.f32.mxu0 %vm33_vm3, %v3826_v13  ;;  %3560 = vmatprep.subr.msk.bf16.mxu0 %vm3730_vm2, %v3558_v41 }
 0x9eb   :  { %3407 = vmatpush3.msk.msra.mxu1 %vm330_vm4, %v1651_v33 }
 0x9ec   :  { %3421 = vmatmul.mubr.msk.f32.vlgmr.msra.gmra.mrb[20].mxu0 %vm33_vm3, %v3830_v14  ;;  %3411 = vmatprep.subr.msk.mxu1 %vm330_vm4, %v1166_v43 }
 0x9ed   :  { %3563 = vmatpush3.bf16.msk.msra.mxu0 %vm3730_vm2, %v3558_v41  ;;  %3427 = vmatprep.mubr.msk.f32.mxu0 %vm33_vm3, %v3826_v13 }
 0x9ee   :  { %3435 = vmatprep.subr.mxu0 %v3696_v52 }
 0x9f0   :  { %3428 = vmatmul.mubr.msk.f32.vlgmr.msra.gmra.mrb[22].mxu0 %vm33_vm3, %v3830_v14 }
 0x9f1   :  { %3437 = vmatprep.mubr.msk.f32.mxu0 %vm3697_vm6, %v3696_v52 }
 0xabb   :  { %v1647_v44 = vpop.f32.mrb[18].mxu0 }
 0xabc   :  { %v1574_v45 = vpop.f32.mrb[16].mxu1  ;;  %v3405_v46 = vpop.f32.mrb[19].mxu0 }
 0xabd   :  { %v3400_v47 = vpop.f32.mrb[17].mxu1  ;;  %3408 = vmatprep.mubr.msk.f32.mxu1 %vm323_vm5, %v1574_v45 }
 0xabe   :  { %3409 = vmatmul.mubr.msk.f32.vlgmr.msra.gmra.mrb[18].mxu1 %vm323_vm5, %v1647_v44  ;;  %v3169_v44 = vld [vmem:[%s4117_s1 + $0xe8] ss:$0 sm:$0xff] }
 0xabf   :  { %3412 = vmatpush3.msk.msra.mxu1 %vm330_vm4, %v1166_v43  ;;  %3413 = vmatprep.mubr.msk.f32.mxu1 %vm323_vm5, %v3904_v59  ;;  %v3422_v13 = vpop.f32.mrb[20].mxu0 }
 0xac0   :  { %v1891_v14 = vpop.f32.mrb[21].mxu0  ;;  %3430 = vmatprep.subr.mxu1 %v3696_v52 }
 0xac3   :  { %v3429_v48 = vpop.f32.mrb[22].mxu0 }
 0xac4   :  { %v1971_v49 = vpop.f32.mrb[23].mxu0  ;;  %3436 = vmatpush3.xpose.msk.msra.mxu0 %vm323_vm5, %v3429_v48 }
 0xac5   :  { %3445 = vmatprep.subr.mxu0 %v3696_v52 }
 0xac6   :  { %3414 = vmatmul.mubr.msk.f32.vlgmr.msra.gmra.mrb[18].mxu1 %vm323_vm5, %v3902_v57 }
 0xac7   :  { %3431 = vmatpush3.xpose.msk.msra.mxu1 %vm323_vm5, %v1971_v49  ;;  %3438 = vmatmul.mubr.msk.f32.vlgmr.msra.gmra.mrb[24].mxu0 %vm323_vm5, %v3422_v13 }
 0xac8   :  { %3446 = vmatpush3.msra.mxu0 %v3422_v13  ;;  %3432 = vmatprep.mubr.msk.f32.mxu1 %vm3697_vm6, %v3696_v52 }
 0xac9   :  { %3440 = vmatprep.subr.mxu1 %v3696_v52  ;;  %3447 = vmatprep.mubr.msk.f32.mxu0 %vm3697_vm6, %v3696_v52 }
 0xaca   :  { %3433 = vmatmul.mubr.msk.f32.vlgmr.msra.gmra.mrb[20].mxu1 %vm323_vm5, %v1891_v14  ;;  %3566 = vmatprep.subr.msk.bf16.mxu0 %vm3730_vm2, %v3564_v27 }
 0xacb   :  { %3441 = vmatpush3.msra.mxu1 %v1891_v14  ;;  %3442 = vmatprep.mubr.msk.f32.mxu1 %vm3697_vm6, %v3696_v52 }
 0xacc   :  { %3450 = vmatprep.subr.msk.mxu1 %vm330_vm4, %v2304_v18 }
 0xb9a   :  { %v2128_v50 = vpop.f32.mrb[24].mxu0 }
 0xb9b   :  { %v2133_v51 = vmul.f32 %v2128_v50, %v3854_v22  ;;  %v3439_v53 = vpop.f32.mrb[25].mxu0 }
 0xb9c   :  { %v2597_v53 = vld [vmem:[%s4117_s1 + $0x120] sm:$0x1] }
 0xb9d   :  { %v2052_v54 = vpop.f32.mrb[20].mxu1  ;;  %v2135_v55 = vadd.f32 %v2133_v51, %v3856_v24  ;;  %v2596_v51 = vld [vmem:[%s4117_s1 + $0x118] sm:$0xff] }
 0xb9e   :  { %v2132_v56 = vmul.f32 %v2052_v54, %v3854_v22  ;;  %v3434_v57 = vpop.f32.mrb[21].mxu1  ;;  %v3578_v54 = vpack.c.bf16 %v2597_v53, %v2596_v51 }
 0xb9f   :  { %v2139_v58 = vsel %vm597_vm7, %v2135_v55, -inf }
 0xba0   :  { %2140 = vmax.xlane.f32.xlu0 %v2139_v58  ;;  %v2134_v59 = vadd.f32 %v2132_v56, %v3856_v24  ;;  %v2688_v56 = vld [vmem:[%s4117_s1 + $0x138] sm:$0x1]  ;;  %v3173_v58 = vld [vmem:[%s4117_s1 + $0x110] ss:$0 sm:$0xff] }
 0xba2   :  { %v2136_v60 = vsel %vm597_vm7, %v2134_v59, -inf }
 0xba3   :  { %2137 = vmax.xlane.f32.xlu1 %v2136_v60 }
 0xc2d   :  { %v2141_v61 = vpop.xlane.xlu0 %2140 }
 0xc2e   :  { %v2143_v62 = vsub.f32 %v2135_v55, %v2141_v61  ;;  %v2687_v55 = vld [vmem:[%s4117_s1 + $0x130] sm:$0xff] }
 0xc2f   :  { %v3584_v57 = vpack.c.bf16 %v2688_v56, %v2687_v55 }
 0xc30   :  { %v2146_v63 = vmul.f32 1.442695, %v2143_v62  ;;  %v2138_v0 = vpop.xlane.xlu1 %2137 }
 0xc31   :  { %v2142_v1 = vsub.f32 %v2134_v59, %v2138_v0 }
 0xc32   :  { %3636 = vpow2.f32 %v2146_v63 }
 0xc33   :  { %v2144_v3 = vmul.f32 1.442695, %v2142_v1 }
 0xc35   :  { %3638 = vpow2.f32 %v2144_v3 }
 0xc3c   :  { %v3637_v6 = vpop.eup %3636 }
 0xc3d   :  { %v2151_v22 = vsel %vm597_vm7, %v3637_v6, 0.0 }
 0xc3e   :  { %2152 = vadd.xlane.f32.xlu0 %v2151_v22 }
 0xc3f   :  { %v3639_v7 = vpop.eup %3638 }
 0xc40   :  { %v2148_v8 = vsel %vm597_vm7, %v3639_v7, 0.0 }
 0xc41   :  { %2149 = vadd.xlane.f32.xlu1 %v2148_v8 }
 0xccb   :  { %v2153_v24 = vpop.xlane.xlu0 %2152 }
 0xccc   :  { %3640 = vrcp.f32 %v2153_v24 }
 0xcce   :  { %v2150_v9 = vpop.xlane.xlu1 %2149 }
 0xccf   :  { %3642 = vrcp.f32 %v2150_v9 }
 0xcd6   :  { %v3641_v10 = vpop.eup %3640 }
 0xcd7   :  { %v2157_v15 = vmul.f32 %v3641_v10, %v3637_v6 }
 0xcd9   :  { %v3643_v16 = vpop.eup %3642  ;;  %3448 = vmatmul.mubr.msk.f32.vlgmr.msra.gmra.mrb[26].mxu0 %vm597_vm7, %v2157_v15 }
 0xcda   :  { %v2156_v17 = vmul.f32 %v3643_v16, %v3639_v7  ;;  %3569 = vmatpush3.bf16.msk.msra.mxu0 %vm3730_vm2, %v3564_v27 }
 0xcdb   :  { %3580 = vmatprep.subr.msk.bf16.mxu0 %vm3730_vm2, %v3578_v54 }
 0xcdc   :  { %3443 = vmatmul.mubr.msk.f32.vlgmr.msra.gmra.mrb[22].mxu1 %vm597_vm7, %v2156_v17 }
 0xcdd   :  { %3451 = vmatpush3.msk.msra.mxu1 %vm330_vm4, %v2304_v18 }
 0xcde   :  { %3571 = vmatprep.subr.bf16.mxu1 %v3570_v42 }
 0xdac   :  { %v2300_v19 = vpop.f32.mrb[26].mxu0 }
 0xdad   :  { %v3449_v20 = vpop.f32.mrb[27].mxu0 }
 0xdaf   :  { %v2227_v21 = vpop.f32.mrb[22].mxu1 }
 0xdb0   :  { %v3444_v23 = vpop.f32.mrb[23].mxu1  ;;  %3452 = vmatprep.mubr.msk.f32.mxu1 %vm323_vm5, %v2227_v21 }
 0xdb1   :  { %3453 = vmatmul.mubr.msk.f32.vlgmr.msra.gmra.mrb[18].mxu1 %vm323_vm5, %v2300_v19 }
 0xdb2   :  { %3573 = vmatpush3.bf16.msra.mxu1 %v3570_v42  ;;  %v2802_v42 = vmul.f32 %v2801_v12, %v2800_v11 }
 0xe84   :  { %v3454_v30 = vpop.f32.mrb[18].mxu1 }
 0xe85   :  { %v2394_v32 = vmul.f32 %v3454_v30, %v2392_v29  ;;  %v2380_v33 = vpop.f32.mrb[19].mxu1 }
 0xe86   :  { %v2393_v35 = vmul.f32 %v2392_v29, %v2380_v33  ;;  %v3176_v29 = vld [vmem:[%s4117_s1 + $0x128] ss:$0 sm:$0xff] }
 0xe87   :  { %v2399_v36 = vadd.f32 %v2397_v31, %v2394_v32 }
 0xe88   :  { %v2398_v37 = vadd.f32 %v2396_v34, %v2393_v35 }
 0xe89   :  { %v2401_v38 = vadd.f32 %v2399_v36, %v3743_v5  ;;  %v2502_v5 = vld [vmem:[%s4117_s1 + $0x108] sm:$0xff] }
 0xe8a   :  { %v2400_v39 = vadd.f32 %v2398_v37, %v3728_v2  ;;  %v2501_v2 = vld [vmem:[%s4117_s1 + $0x100] sm:$0xff] }
 0xe8b   :  { %v2403_v41 = vmul.f32 0.999995, %v2401_v38  ;;  %v3574_v43 = vpack.c.bf16 %v2502_v5, %v2501_v2 }
 0xe8c   :  { %v2402_v40 = vmul.f32 0.999995, %v2400_v39 }
 0xe8d   :  { %3575 = vmatprep.subr.bf16.mxu1 %v3574_v43 }
 0xe8e   :  { %3459 = vmatprep.mubr.msk.f32.mxu0 %vm33_vm3, %v2402_v40  ;;  %3577 = vmatpush3.bf16.msra.mxu1 %v3574_v43 }
 0xe8f   :  { %3460 = vmatmul.mubr.msk.f32.vlgmr.msra.gmra.mrb[28].mxu0 %vm33_vm3, %v2403_v41  ;;  %3487 = vmatprep.subr.mxu1 %v3696_v52 }
 0xe90   :  { %3583 = vmatpush3.bf16.msk.msra.mxu0 %vm3730_vm2, %v3578_v54  ;;  %v2822_v54 = vld [vmem:[%s4117_s1 + $0x140] sm:$0xff] }
 0xe91   :  { %3586 = vmatprep.subr.msk.bf16.mxu0 %vm3730_vm2, %v3584_v57 }
 0xf62   :  { %v3461_v45 = vpop.f32.mrb[28].mxu0 }
 0xf63   :  { %v2492_v46 = vadd.f32 %v3461_v45, %v3169_v44  ;;  %v2486_v47 = vpop.f32.mrb[29].mxu0  ;;  %v3698_v45 = vmov 0  }
 0xf64   :  { %v2487_v13 = vadd.f32 %v3169_v44, %v2486_v47  ;;  %3606 = vset.pattern.permute.xlu1 %v3698_v45  ;;  %3607 = vset.pattern.permute.xlu0 %v3698_v45 }
 0xf65   :  { %v2496_v14 = vmax.f32 %v2492_v46, 0.0  ;;  %v2797_v46 = vstv %s3103_s16 }
 0xf66   :  { %v2495_v48 = vmax.f32 %v2487_v13, 0.0 }
 0xf67   :  { %v2498_v50 = vmul.f32 0.999995, %v2496_v14 }
 0xf68   :  { %v2497_v49 = vmul.f32 0.999995, %v2495_v48 }
 0xf6a   :  { %3470 = vmatprep.mubr.msk.f32.mxu1 %vm2508_vm8, %v2497_v49 }
 0xf6b   :  { %3471 = vmatmul.mubr.msk.f32.vlgmr.msra.gmra.mrb[24].mxu1 %vm2508_vm8, %v2498_v50 }
 0xf6c   :  { %3489 = vmatprep.mubr.msk.f32.mxu1 %vm3697_vm6, %v3696_v52  ;;  %3488 = vmatpush3.msra.mxu1 %v2822_v54 }
 0xf6d   :  { %3499 = vmatprep.subr.mxu1 %v3696_v52 }
0x103e   :  { %v3472_v59 = vpop.f32.mrb[24].mxu1 }
0x103f   :  { %v2587_v60 = vadd.f32 %v3472_v59, %v3173_v58  ;;  %v2581_v61 = vpop.f32.mrb[25].mxu1 }
0x1040   :  { %v2582_v62 = vadd.f32 %v3173_v58, %v2581_v61 }
0x1041   :  { %v2591_v63 = vmax.f32 %v2587_v60, 0.0 }
0x1042   :  { %v2590_v0 = vmax.f32 %v2582_v62, 0.0  ;;  %v2922_v62 = vld [vmem:[%s4117_s1 + $0x150] sm:$0xff] }
0x1043   :  { %v2593_v1 = vadd.f32 %v2591_v63, %v2403_v41  ;;  %v2923_v63 = vld [vmem:[%s4117_s1 + $0x158] sm:$0xff] }
0x1044   :  { %v2592_v3 = vadd.f32 %v2590_v0, %v2402_v40  ;;  %v2804_v40 = vlaneseq  ;;  %v3591_v0 = vpack.c.bf16 %v2923_v63, %v2922_v62 }
0x1045   :  { %v2595_v22 = vmul.f32 0.999995, %v2593_v1  ;;  %v3699_v1 = vmov 0.0|0.0  }
0x1046   :  { %v2594_v6 = vmul.f32 0.999995, %v2592_v3  ;;  %v2805_v41 = vshrl.u32 %v2804_v40, 7  ;;  %v2837_v55 = vand.u32 127, %v2804_v40  ;;  %v3183_v3 = vld [vmem:[%s4117_s1 + $0x148] ss:$0 sm:$0xff] }
0x1048   :  { %3477 = vmatprep.mubr.msk.f32.mxu0 %vm33_vm3, %v2594_v6  ;;  %v2806_v2 = vsub.s32 0, %v2805_v41  ;;  %v2813_v5 = vsub.s32 1, %v2805_v41 }
0x1049   :  { %3478 = vmatmul.mubr.msk.f32.vlgmr.msra.gmra.mrb[30].mxu0 %vm33_vm3, %v2595_v22 }
0x104a   :  { %3589 = vmatpush3.bf16.msk.msra.mxu0 %vm3730_vm2, %v3584_v57  ;;  %3484 = vmatprep.mubr.msk.f32.mxu0 %vm33_vm3, %v2594_v6  ;;  %v2807_v43 = vrot.slane %v2802_v42, %v2806_v2  ;;  %v2814_v44 = vrot.slane %v2802_v42, %v2813_v5  ;;  %v2840_v57 = vsub.s32 %v2837_v55, %v2805_v41 }
0x104b   :  { %3590 = vmatprep.subr.bf16.mxu0 %v3699_v1 }
0x104d   :  { %3485 = vmatmul.mubr.msk.f32.vlgmr.msra.gmra.mrb[32].mxu0 %vm33_vm3, %v2595_v22 }
0x104e   :  { %3496 = vmatprep.mubr.msk.f32.mxu0 %vm3697_vm6, %v3696_v52  ;;  %3592 = vmatpush3.bf16.msra.mxu0 %v3591_v0 }
0x111c   :  { %v3479_v7 = vpop.f32.mrb[30].mxu0 }
0x111d   :  { %v2678_v8 = vpop.f32.mrb[31].mxu0  ;;  %v2684_v32 = vadd.f32 %v3479_v7, %v3176_v29 }
0x111e   :  { %v2679_v34 = vadd.f32 %v3176_v29, %v2678_v8 }
0x1120   :  { %v3486_v24 = vpop.f32.mrb[32].mxu0 }
0x1121   :  { %v2758_v9 = vpop.f32.mrb[33].mxu0  ;;  %v2770_v10 = vsel %vm33_vm3, %v3486_v24, -inf }
0x1122   :  { %2771 = vmax.xlane.f32.xlu0 %v2770_v10  ;;  %v2767_v15 = vsel %vm33_vm3, %v2758_v9, -inf }
0x1123   :  { %2768 = vmax.xlane.f32.xlu1 %v2767_v15 }
0x11af   :  { %v2772_v16 = vpop.xlane.xlu0 %2771 }
0x11b0   :  { %v2774_v4 = vsub.f32 %v3486_v24, %v2772_v16  ;;  %v2769_v17 = vpop.xlane.xlu1 %2768  ;;  %v3005_v24 = vld [vmem:[%s4117_s1 + $0x168] sm:$0xff] }
0x11b1   :  { %v2773_v18 = vsub.f32 %v2758_v9, %v2769_v17  ;;  %v3185_v9 = vld [vmem:[%s4117_s1 + $0x160] ss:$0 sm:$0xff] }
0x11b2   :  { %v2777_v19 = vmul.f32 1.442695, %v2774_v4 }
0x11b3   :  { %v2775_v20 = vmul.f32 1.442695, %v2773_v18  ;;  %v3187_v18 = vld [vmem:[%s4117_s1 + $0x170] ss:$0 sm:$0xff] }
0x11b4   :  { %3644 = vpow2.f32 %v2777_v19 }
0x11b5   :  { %3646 = vpow2.f32 %v2775_v20 }
0x11be   :  { %v3645_v21 = vpop.eup %3644 }
0x11bf   :  { %v3647_v23 = vpop.eup %3646  ;;  %v2782_v25 = vsel %vm33_vm3, %v3645_v21, 0.0 }
0x11c0   :  { %2783 = vadd.xlane.f32.xlu0 %v2782_v25  ;;  %v2779_v26 = vsel %vm33_vm3, %v3647_v23, 0.0 }
0x11c1   :  { %2780 = vadd.xlane.f32.xlu1 %v2779_v26 }
0x124d   :  { %v2784_v27 = vpop.xlane.xlu0 %2783 }
0x124e   :  { %3648 = vrcp.f32 %v2784_v27  ;;  %v2781_v28 = vpop.xlane.xlu1 %2780 }
0x124f   :  { %3650 = vrcp.f32 %v2781_v28 }
0x1258   :  { %v3649_v30 = vpop.eup %3648 }
0x1259   :  { %v3651_v31 = vpop.eup %3650  ;;  %v2788_v33 = vmul.f32 %v3649_v30, %v3645_v21 }
0x125a   :  { %v2787_v35 = vmul.f32 %v3651_v31, %v3647_v23 }
0x125b   :  { %v2790_v36 = vmul.f32 %v2788_v33, %v2684_v32 }
0x125c   :  { %v2789_v37 = vmul.f32 %v2787_v35, %v2679_v34 }
0x125d   :  { %v2794_v38 = vsel %vm33_vm3, %v2790_v36, 0.0 }
0x125e   :  { %2795 = vadd.xlane.f32.xlu0 %v2794_v38  ;;  %v2791_v39 = vsel %vm33_vm3, %v2789_v37, 0.0 }
0x125f   :  { %2792 = vadd.xlane.f32.xlu1 %v2791_v39 }
0x1270   :  { %2809 = vbcast.lane.b32.xlu1 %v2807_v43, 256 }
0x1274   :  { %2816 = vbcast.lane.b32.xlu0 %v2814_v44, 256 }
0x12eb   :  { %v2796_v47 = vpop.xlane.xlu0 %2795 }
0x12ec   :  { %v2793_v13 = vpop.xlane.xlu1 %2792  ;;  %v2799_v51 = vmul.f32 %v2797_v46, %v2796_v47 }
0x12ed   :  { %v2798_v14 = vmul.f32 %v2797_v46, %v2793_v13 }
0x12ef   :  { %v2817_v50 = vpop.permute.xlu0 %2816 }
0x12f0   :  { %v2810_v48 = vpop.permute.xlu1 %2809  ;;  %v2821_v53 = vadd.f32 %v2817_v50, %v2799_v51 }
0x12f1   :  { %v2820_v49 = vadd.f32 %v2810_v48, %v2798_v14 }
0x12f3   :  { %2831 = vperm.xlu1 %3606, %v2820_v49  }
0x12f7   :  { %2834 = vperm.xlu1 %3606, %v2821_v53  }
0x1372   :  { %v2832_v56 = vpop.permute.xlu1 %2831 }
0x1373   :  { %v2841_v59 = vrot.slane %v2832_v56, %v2840_v57 }
0x1376   :  { %v2835_v58 = vpop.permute.xlu1 %2834 }
0x1377   :  { %v2845_v60 = vrot.slane %v2835_v58, %v2840_v57 }
0x1379   :  { %v2847_v61 = vsel %vm2846_vm9, %v2845_v60, %v2841_v59 }
0x137a   :  { %3490 = vmatmul.mubr.msk.f32.vlgmr.msra.gmra.mrb[26].mxu1 %vm597_vm7, %v2847_v61 }
0x137b   :  { %3501 = vmatprep.mubr.msk.f32.mxu1 %vm3697_vm6, %v3696_v52  ;;  %3500 = vmatpush3.msra.mxu1 %v3005_v24 }
0x144d   :  { %v2916_v6 = vpop.f32.mrb[26].mxu1 }
0x144e   :  { %v2917_v22 = vadd.f32 %v3183_v3, %v2916_v6  ;;  %v3491_v7 = vpop.f32.mrb[27].mxu1 }
0x1450   :  { %v2920_v52 = vmax.f32 %v2917_v22, 0.0 }
0x1452   :  { %v2921_v8 = vmul.f32 0.999995, %v2920_v52 }
0x1454   :  { %3497 = vmatmul.mubr.msk.f32.vlgmr.msra.gmra.mrb[34].mxu0 %vm2929_vm10, %v2921_v8 }
0x1527   :  { %v2999_v10 = vpop.f32.mrb[34].mxu0 }
0x1528   :  { %v3000_v15 = vadd.f32 %v3185_v9, %v2999_v10  ;;  %v3498_v16 = vpop.f32.mrb[35].mxu0 }
0x152a   :  { %v3003_v4 = vmax.f32 %v3000_v15, 0.0 }
0x152c   :  { %v3004_v17 = vmul.f32 0.999995, %v3003_v4 }
0x152e   :  { %3502 = vmatmul.mubr.msk.f32.vlgmr.msra.gmra.mrb[28].mxu1 %vm597_vm7, %v3004_v17 }
0x1601   :  { %v3080_v19 = vpop.f32.mrb[28].mxu1 }
0x1602   :  { %v3081_v20 = vadd.f32 %v3187_v18, %v3080_v19  ;;  %v3503_v21 = vpop.f32.mrb[29].mxu1 }
0x1604   :  { %3652 = vtanh.f32 %v3081_v20 }
0x160e   :  { %v3653_v23 = vpop.eup %3652 }
0x160f   :  { %3086 = vst.msk [vmem:[#allocation5] sm:$0x3] %vm3085_vm11, %v3653_v23 }
0x1610   :  { %3677 = shalt.err (!%p3674_p9)
}
0x1611   :  { %s3678_s1 = scalar_lea.hbm %s4118_s2, 32 }
0x1612   :  { %p3679_p10 = scmp.ne.s32.totalorder %s4118_s2, %s3678_s1  ;;  %p3682_p11 = scmp.lt.u32.totalorder %s3678_s1, %s4118_s2 }
0x1614   :  { %p3684_p12 = pnand %p3682_p11, %p3679_p10 }
0x1616   :  { %3687 = shalt.err (!%p3684_p12)
}
0x1617   :  { %3096 = dma.vmem_to_hbm [thread:$0]  %s3094_s3, 32, %s4118_s2, [#allocation3]  }
0x1618   :  { %3690 = dma.done.wait [#allocation3], 32  }
0x1619   :  { %3691 = vsyncadd [#allocation3], 4294967264 }
0x161a   :  { %3100 = vsyncpa [#allocation3], 1 }
0x161b   :  { %3101 = vsyncpa [#allocation4], 1 }

</bundles_post_ra>
